<compile_context>
chip_gen: v7x
topology: tpu7x:2x2x1
jax: 0.10.0
libtpu: 0.0.40
codegen_flags: <defaults>
</compile_context>

<pallas_src>
import numpy as np
import jax
import jax.numpy as jnp
from jax.experimental import pallas as pl
from jax.experimental.pallas import tpu as pltpu

BETA = 1e-6        # module beta
NOISE = 0.0        # module noise (default 0 -> cond perturbation is identity)
GN_EPS = 1e-5      # torch.nn.GroupNorm default eps
TARGET_ROWS = 1024  # target batch rows per grid step (VMEM-safe on v5e/v6e/v7x)


def _cdiv(a, b):
    return (a + b - 1) // b


def _round_up(a, m):
    return _cdiv(a, m) * m


# ----------------------------------------------------------------------------
# Pallas kernel: one grid step = one block of batch rows.
# ----------------------------------------------------------------------------
def _encoder_kernel(
    x_ref, cond_ref, eps_ref,                               # per-block data
    w1e_ref, w1m_ref, vec1_ref, m1_ref, m1t_ref,            # block  (conv1 + GN1)
    w2e_ref, w2m_ref, vec2_ref, m2_ref, m2t_ref,            # block2 (conv2 + GN2)
    wmx_ref, wmc_ref, bm_ref, whead_ref, bhead_ref, bmg_ref,  # mlp + fused heads
    out_ref,                                                # fused [ z | KL terms ]
):
    f32, bf16 = jnp.float32, jnp.bfloat16
    L = eps_ref.shape[1]

    def dot(a, b):
        return jnp.dot(a, b, preferred_element_type=f32)

    def group_norm(h_pre, mean_g, minv_ref, mt_ref, vec_ref):
        # mean_g: (Bb, G) group means (bias included, from the folded projection).
        # minv:   membership / n  (variance projection);  mt: membership^T.
        mean_l = dot(mean_g.astype(bf16), mt_ref[...])        # broadcast to lanes
        d = h_pre - mean_l
        var_g = dot((d * d).astype(bf16), minv_ref[...])      # two-pass, biased
        inv_g = jax.lax.rsqrt(var_g + GN_EPS)
        inv_l = dot(inv_g.astype(bf16), mt_ref[...])
        return d * inv_l * vec_ref[1:2] + vec_ref[2:3]        # rows 1/2 = gamma/beta

    x_bf = x_ref[...].astype(bf16)

    # ---- block: Conv1d(k=3, pad=1) as ONE banded matmul + GroupNorm + Mish ----
    h_pre = dot(x_bf, w1e_ref[...]) + vec1_ref[0:1]           # (Bb, 384)
    mean1 = dot(x_bf, w1m_ref[...]) + bmg_ref[0:1]            # (Bb, G), conv-independent
    h = group_norm(h_pre, mean1, m1_ref, m1t_ref, vec1_ref)

    # Mish with a single exponential: tanh(softplus(h)) = 1 - 2/(t^2 + 2t + 2)
    t = jnp.exp(jnp.minimum(h, 20.0))
    tanh_sp = 1.0 - 2.0 * pl.reciprocal(t * (t + 2.0) + 2.0, approx=True)
    h = jnp.where(h > 20.0, h, h * tanh_sp)

    # ---- block2: Conv1d + GroupNorm -------------------------------------------
    h_bf = h.astype(bf16)
    h2_pre = dot(h_bf, w2e_ref[...]) + vec2_ref[0:1]          # (Bb, 256)
    mean2 = dot(h_bf, w2m_ref[...]) + bmg_ref[1:2]
    h2 = group_norm(h2_pre, mean2, m2_ref, m2t_ref, vec2_ref)

    # ---- mlp(concat(flatten(x), cond)): flatten is already the lane layout ----
    y = (dot(h2.astype(bf16), wmx_ref[...])
         + dot(cond_ref[...], wmc_ref[...]) + bm_ref[...])

    # ---- fused fc_mu | fc_var head, reparameterization, per-element KL terms --
    head = dot(y, whead_ref[...]) + bhead_ref[...]            # (Bb, 2L) f32
    mu = head[:, :L]
    lv = head[:, L:]                                          # log(sigma)
    sigma = jnp.exp(lv)
    out_ref[:, :L] = mu + sigma * eps_ref[...]                # z
    out_ref[:, L:] = sigma * sigma + mu * mu - lv - 0.5       # KL terms (summed outside)


# ----------------------------------------------------------------------------
# Wrapper: batch blocking, BlockSpecs, pallas_call, KL reduction.
# ----------------------------------------------------------------------------
_PARAM_ORDER = ("w1e", "w1m", "vec1", "m1", "m1t",
                "w2e", "w2m", "vec2", "m2", "m2t",
                "wmxf", "wmc", "bm", "whead", "bhead", "bmg")


@jax.jit
def encoder_forward(x, cond, eps, noise_draw, kp):
    """x: (B, C_in, T) float32 (torch NCW), cond: (B, cond_dim), eps: (B, L)."""
    B, c_in, T = x.shape
    cond_dim = cond.shape[1]
    L = eps.shape[1]

    # glue: cond noise perturbation (identity at NOISE == 0, the module default)
    cond_n = (cond + noise_draw * NOISE - NOISE / 2).astype(jnp.float32)
    x_flat = x.reshape(B, c_in * T).astype(jnp.float32)    # channel-major flatten (free)
    eps_f = eps.astype(jnp.float32)

    # >= 2 blocks (v7x dual-TensorCore), 8-row aligned, padding-minimizing.
    nb = max(2, _cdiv(B, TARGET_ROWS))
    B_blk = max(8, _round_up(_cdiv(B, nb), 8))
    Bp = nb * B_blk
    if Bp != B:
        pad = Bp - B
        x_flat = jnp.pad(x_flat, ((0, pad), (0, 0)))
        cond_n = jnp.pad(cond_n, ((0, pad), (0, 0)))
        eps_f = jnp.pad(eps_f, ((0, pad), (0, 0)))

    plist = [kp[k] for k in _PARAM_ORDER]

    data_specs = [
        pl.BlockSpec((B_blk, c_in * T), lambda b: (b, 0)),
        pl.BlockSpec((B_blk, cond_dim), lambda b: (b, 0)),
        pl.BlockSpec((B_blk, L), lambda b: (b, 0)),
    ]
    param_specs = [pl.BlockSpec(p.shape, lambda b: (0, 0)) for p in plist]
    out_spec = pl.BlockSpec((B_blk, 2 * L), lambda b: (b, 0))   # fused [z | KL]

    out = pl.pallas_call(
        _encoder_kernel,
        grid=(nb,),
        in_specs=data_specs + param_specs,
        out_specs=out_spec,
        out_shape=jax.ShapeDtypeStruct((Bp, 2 * L), jnp.float32),
        compiler_params=pltpu.CompilerParams(
            dimension_semantics=("parallel",),               # independent batch blocks
            vmem_limit_bytes=48 * 1024 * 1024),
    )(x_flat, cond_n, eps_f, *plist)

    z = out[:B, :L]
    kl = BETA * jnp.sum(out[:B, L:])
    return z, kl


# ----------------------------------------------------------------------------
# Host-side parameter packing (banded conv matrices, folded group-mean weights,
# 128-aligned lane padding, bf16 MXU operands).
# ----------------------------------------------------------------------------
def _membership(C, G, T, pad_lanes):
    """One-hot (T*C -> padded lanes, G) group membership; padded lanes in no group."""
    lanes = T * C
    grp = (np.arange(lanes) % C) // (C // G)
    m = np.zeros((pad_lanes, G), np.float32)
    m[np.arange(lanes), grp] = 1.0
    return m


def _expand_conv(w, T, in_time_minor, n_rows, n_cols):
    """Expand 3-tap Conv1d(pad=1) taps (3, Cin, Cout) into a banded (n_rows, n_cols) matrix.

    in_time_minor=True : input flat index = c*T + t  (conv1: x is (B, Cin, T) reshaped).
    in_time_minor=False: input flat index = t*Cin + c (conv2: time-major hidden layout).
    Output flat index is t*Cout + o.  Zero padding (time edges + lane padding) is
    implicit: out-of-range taps / padded lanes simply have no band entry.
    """
    w = np.asarray(w, np.float32)
    K, cin, cout = w.shape
    W = np.zeros((n_rows, n_cols), np.float32)
    for t in range(T):
        cols = t * cout + np.arange(cout)
        for k in range(K):
            ts = t + k - 1
            if 0 <= ts < T:
                rows = np.arange(cin) * T + ts if in_time_minor else ts * cin + np.arange(cin)
                W[np.ix_(rows, cols)] = w[k]
    return W


def init_params(key, c_in, c_mid, c_out, T, cond_dim, L, G):
    """Synthetic 'logical' parameters (torch-equivalent tap / affine shapes)."""
    ks = jax.random.split(key, 16)
    nrm = lambda k, s, sc: sc * jax.random.normal(k, s, jnp.float32)
    mlp_in = c_out * T + cond_dim
    return {
        "w1": nrm(ks[0], (3, c_in, c_mid), 1.0 / np.sqrt(3 * c_in)),
        "b1": nrm(ks[1], (1, c_mid), 0.1),
        "g1": 1.0 + nrm(ks[2], (1, c_mid), 0.1),
        "bt1": nrm(ks[3], (1, c_mid), 0.1),
        "w2": nrm(ks[4], (3, c_mid, c_out), 1.0 / np.sqrt(3 * c_mid)),
        "b2": nrm(ks[5], (1, c_out), 0.1),
        "g2": 1.0 + nrm(ks[6], (1, c_out), 0.1),
        "bt2": nrm(ks[7], (1, c_out), 0.1),
        "wmx": nrm(ks[8], (T, c_out, L), 1.0 / np.sqrt(mlp_in)),
        "wmc": nrm(ks[9], (cond_dim, L), 1.0 / np.sqrt(mlp_in)),
        "bm": nrm(ks[10], (1, L), 0.1),
        "wmu": nrm(ks[11], (L, L), 1.0 / np.sqrt(L)),
        "bmu": nrm(ks[12], (1, L), 0.1),
        "wvr": nrm(ks[13], (L, L), 1.0 / np.sqrt(L)),
        "bvr": nrm(ks[14], (1, L), 0.1),
    }


def pack_params(p, T, G):
    """Pack logical params into the 16 fused kernel arrays (bf16 MXU operands)."""
    c_in = p["w1"].shape[1]
    c_mid = p["b1"].shape[1]
    c_out = p["b2"].shape[1]
    L = p["bm"].shape[1]
    mid_pad = _round_up(T * c_mid, 128)       # 352 -> 384
    out_pad = _round_up(T * c_out, 128)       # 176 -> 256
    n1 = T * (c_mid // G)                     # elements per group (GroupNorm1)
    n2 = T * (c_out // G)                     # elements per group (GroupNorm2)

    def lane_pad(v, C, pad):                  # per-channel -> per-(time*channel) lane
        out = np.zeros((1, pad), np.float32)
        out[:, :T * C] = np.tile(np.asarray(v, np.float32), (1, T))
        return out

    w1e = _expand_conv(p["w1"], T, True, c_in * T, mid_pad)
    w2e = _expand_conv(p["w2"], T, False, mid_pad, out_pad)
    m1 = _membership(c_mid, G, T, mid_pad)
    m2 = _membership(c_out, G, T, out_pad)
    b1l, g1l, bt1l = (lane_pad(p[k], c_mid, mid_pad) for k in ("b1", "g1", "bt1"))
    b2l, g2l, bt2l = (lane_pad(p[k], c_out, out_pad) for k in ("b2", "g2", "bt2"))

    # Folded group-mean projections (mean_g = x @ w1m + b1m, independent of conv out).
    w1m, b1m = w1e @ m1 / n1, b1l @ m1 / n1
    w2m, b2m = w2e @ m2 / n2, b2l @ m2 / n2

    wmxf = np.zeros((out_pad, L), np.float32)
    wmxf[:T * c_out] = np.asarray(p["wmx"], np.float32).reshape(T * c_out, L)

    bf, f32 = jnp.bfloat16, jnp.float32
    return {
        "w1e": jnp.asarray(w1e, bf), "w1m": jnp.asarray(w1m, bf),
        "vec1": jnp.asarray(np.concatenate([b1l, g1l, bt1l], 0), f32),
        "m1": jnp.asarray(m1 / n1, bf), "m1t": jnp.asarray(m1.T, bf),
        "w2e": jnp.asarray(w2e, bf), "w2m": jnp.asarray(w2m, bf),
        "vec2": jnp.asarray(np.concatenate([b2l, g2l, bt2l], 0), f32),
        "m2": jnp.asarray(m2 / n2, bf), "m2t": jnp.asarray(m2.T, bf),
        "wmxf": jnp.asarray(wmxf, bf),
        "wmc": jnp.asarray(p["wmc"], f32), "bm": jnp.asarray(p["bm"], f32),
        "whead": jnp.concatenate([p["wmu"], p["wvr"]], axis=1).astype(f32),
        "bhead": jnp.concatenate([p["bmu"], p["bvr"]], axis=1).astype(f32),
        "bmg": jnp.asarray(np.concatenate([b1m, b2m], 0), f32),
    }


# ----------------------------------------------------------------------------
# Pure-JAX f32 reference (correctness check; uses the un-packed logical params).
# ----------------------------------------------------------------------------
def ref_forward(x, cond, eps, noise_draw, p, G):
    B, c_in, T = x.shape
    xt = jnp.transpose(x, (0, 2, 1))

    def conv(inp_pad, w, b):
        T_ = inp_pad.shape[1] - 2
        out = b[None]
        for k in range(3):
            out = out + jnp.einsum("btc,co->bto", inp_pad[:, k:k + T_, :], w[k])
        return out

    def gn(h, gamma, beta_):
        B_, T_, C_ = h.shape
        hr = h.reshape(B_, T_, G, C_ // G)
        mean = hr.mean(axis=(1, 3), keepdims=True)
        var = hr.var(axis=(1, 3), keepdims=True)
        hn = ((hr - mean) / jnp.sqrt(var + GN_EPS)).reshape(B_, T_, C_)
        return hn * gamma[None] + beta_[None]

    h = conv(jnp.pad(xt, ((0, 0), (1, 1), (0, 0))), p["w1"], p["b1"])
    h = gn(h, p["g1"], p["bt1"])
    h = h * jnp.tanh(jax.nn.softplus(h))
    h2 = conv(jnp.pad(h, ((0, 0), (1, 1), (0, 0))), p["w2"], p["b2"])
    h2 = gn(h2, p["g2"], p["bt2"])

    cond_n = cond + noise_draw * NOISE - NOISE / 2
    y = cond_n @ p["wmc"] + p["bm"] + jnp.einsum("btc,tcl->bl", h2, p["wmx"])
    mu = y @ p["wmu"] + p["bmu"]
    lv = y @ p["wvr"] + p["bvr"]
    sigma = jnp.exp(lv)
    z = mu + sigma * eps
    kl = BETA * jnp.sum(sigma ** 2 + mu ** 2 - lv - 0.5)
    return z, kl


if __name__ == "__main__":
    B, C_IN, C_MID, C_OUT = 2, 4, 32, 16
    T, COND_DIM, LATENT, GROUPS = 11, 36, 16, 8

    key = jax.random.PRNGKey(0)
    kx, kc, ke, kn, kp = jax.random.split(key, 5)
    x = jax.random.normal(kx, (B, C_IN, T), jnp.float32)
    cond = jax.random.normal(kc, (B, COND_DIM), jnp.float32)
    eps = jax.random.normal(ke, (B, LATENT), jnp.float32)        # N(0,1) reparam sample
    noise_draw = jax.random.normal(kn, (B, COND_DIM), jnp.float32)
    params = init_params(kp, C_IN, C_MID, C_OUT, T, COND_DIM, LATENT, GROUPS)
    kparams = pack_params(params, T, GROUPS)

    z, kl = encoder_forward(x, cond, eps, noise_draw, kparams)
    jax.block_until_ready((z, kl))

    z_ref, kl_ref = ref_forward(x, cond, eps, noise_draw, params, GROUPS)
    assert z.shape == (B, LATENT)
    # bf16 MXU operands -> slightly looser tolerance than the all-f32 v2 kernel.
    assert np.allclose(np.asarray(z), np.asarray(z_ref), rtol=5e-2, atol=5e-2), "z mismatch"
    assert np.allclose(float(kl), float(kl_ref), rtol=5e-2, atol=1e-6), "kl mismatch"

    print("KERNEL_OK")
</pallas_src>

<mosaic_0001>
module attributes {stable_mosaic.version = 11 : i64} {
  func.func @_encoder_kernel(%arg0: i32, %arg1: memref<8x44xf32, #tpu.memory_space<vmem>>, %arg2: memref<8x36xf32, #tpu.memory_space<vmem>>, %arg3: memref<8x16xf32, #tpu.memory_space<vmem>>, %arg4: memref<44x384xbf16, #tpu.memory_space<vmem>>, %arg5: memref<44x8xbf16, #tpu.memory_space<vmem>>, %arg6: memref<3x384xf32, #tpu.memory_space<vmem>>, %arg7: memref<384x8xbf16, #tpu.memory_space<vmem>>, %arg8: memref<8x384xbf16, #tpu.memory_space<vmem>>, %arg9: memref<384x256xbf16, #tpu.memory_space<vmem>>, %arg10: memref<384x8xbf16, #tpu.memory_space<vmem>>, %arg11: memref<3x256xf32, #tpu.memory_space<vmem>>, %arg12: memref<256x8xbf16, #tpu.memory_space<vmem>>, %arg13: memref<8x256xbf16, #tpu.memory_space<vmem>>, %arg14: memref<256x16xbf16, #tpu.memory_space<vmem>>, %arg15: memref<36x16xf32, #tpu.memory_space<vmem>>, %arg16: memref<1x16xf32, #tpu.memory_space<vmem>>, %arg17: memref<16x32xf32, #tpu.memory_space<vmem>>, %arg18: memref<1x32xf32, #tpu.memory_space<vmem>>, %arg19: memref<2x8xf32, #tpu.memory_space<vmem>>, %arg20: memref<8x32xf32, #tpu.memory_space<vmem>>) attributes {dimension_semantics = [#tpu.dimension_semantics<parallel>], iteration_bounds = array<i64: 2>, scalar_prefetch = 0 : i64, scratch_operands = 0 : i64, tpu.core_type = #tpu.core_type<tc>, window_params = [{transform_indices = @transform_0, window_bounds = array<i64: 8, 44>}, {transform_indices = @transform_1, window_bounds = array<i64: 8, 36>}, {transform_indices = @transform_2, window_bounds = array<i64: 8, 16>}, {pipeline_mode = #tpu.pipeline_mode<synchronous>, transform_indices = @transform_3, window_bounds = array<i64: 44, 384>}, {pipeline_mode = #tpu.pipeline_mode<synchronous>, transform_indices = @transform_4, window_bounds = array<i64: 44, 8>}, {pipeline_mode = #tpu.pipeline_mode<synchronous>, transform_indices = @transform_5, window_bounds = array<i64: 3, 384>}, {pipeline_mode = #tpu.pipeline_mode<synchronous>, transform_indices = @transform_6, window_bounds = array<i64: 384, 8>}, {pipeline_mode = #tpu.pipeline_mode<synchronous>, transform_indices = @transform_7, window_bounds = array<i64: 8, 384>}, {pipeline_mode = #tpu.pipeline_mode<synchronous>, transform_indices = @transform_8, window_bounds = array<i64: 384, 256>}, {pipeline_mode = #tpu.pipeline_mode<synchronous>, transform_indices = @transform_9, window_bounds = array<i64: 384, 8>}, {pipeline_mode = #tpu.pipeline_mode<synchronous>, transform_indices = @transform_10, window_bounds = array<i64: 3, 256>}, {pipeline_mode = #tpu.pipeline_mode<synchronous>, transform_indices = @transform_11, window_bounds = array<i64: 256, 8>}, {pipeline_mode = #tpu.pipeline_mode<synchronous>, transform_indices = @transform_12, window_bounds = array<i64: 8, 256>}, {pipeline_mode = #tpu.pipeline_mode<synchronous>, transform_indices = @transform_13, window_bounds = array<i64: 256, 16>}, {pipeline_mode = #tpu.pipeline_mode<synchronous>, transform_indices = @transform_14, window_bounds = array<i64: 36, 16>}, {pipeline_mode = #tpu.pipeline_mode<synchronous>, transform_indices = @transform_15, window_bounds = array<i64: 1, 16>}, {pipeline_mode = #tpu.pipeline_mode<synchronous>, transform_indices = @transform_16, window_bounds = array<i64: 16, 32>}, {pipeline_mode = #tpu.pipeline_mode<synchronous>, transform_indices = @transform_17, window_bounds = array<i64: 1, 32>}, {pipeline_mode = #tpu.pipeline_mode<synchronous>, transform_indices = @transform_18, window_bounds = array<i64: 2, 8>}, {transform_indices = @transform_19, window_bounds = array<i64: 8, 32>}]} {
    %c0 = arith.constant 0 : index
    %c0_0 = arith.constant 0 : index
    %0 = vector.load %arg1[%c0, %c0_0] : memref<8x44xf32, #tpu.memory_space<vmem>>, vector<8x44xf32>
    %1 = arith.truncf %0 : vector<8x44xf32> to vector<8x44xbf16>
    %c0_1 = arith.constant 0 : index
    %c0_2 = arith.constant 0 : index
    %2 = vector.load %arg4[%c0_1, %c0_2] : memref<44x384xbf16, #tpu.memory_space<vmem>>, vector<44x384xbf16>
    %cst = arith.constant dense<0.000000e+00> : vector<8x384xf32>
    %3 = tpu.matmul %1, %2, %cst {dimension_numbers = #tpu.dot_dimension_numbers<[1], [0], [0], [1], [0, 0, 1, 1], [], []>} : vector<8x44xbf16>, vector<44x384xbf16>, vector<8x384xf32> -> vector<8x384xf32>
    %c0_3 = arith.constant 0 : index
    %c0_4 = arith.constant 0 : index
    %4 = vector.load %arg6[%c0_3, %c0_4] : memref<3x384xf32, #tpu.memory_space<vmem>>, vector<1x384xf32>
    %5 = vector.broadcast %4 : vector<1x384xf32> to vector<8x384xf32>
    %6 = arith.addf %3, %5 : vector<8x384xf32>
    %c0_5 = arith.constant 0 : index
    %c0_6 = arith.constant 0 : index
    %7 = vector.load %arg5[%c0_5, %c0_6] : memref<44x8xbf16, #tpu.memory_space<vmem>>, vector<44x8xbf16>
    %cst_7 = arith.constant dense<0.000000e+00> : vector<8x8xf32>
    %8 = tpu.matmul %1, %7, %cst_7 {dimension_numbers = #tpu.dot_dimension_numbers<[1], [0], [0], [1], [0, 0, 1, 1], [], []>} : vector<8x44xbf16>, vector<44x8xbf16>, vector<8x8xf32> -> vector<8x8xf32>
    %c0_8 = arith.constant 0 : index
    %c0_9 = arith.constant 0 : index
    %9 = vector.load %arg19[%c0_8, %c0_9] : memref<2x8xf32, #tpu.memory_space<vmem>>, vector<1x8xf32>
    %10 = vector.broadcast %9 : vector<1x8xf32> to vector<8x8xf32>
    %11 = arith.addf %8, %10 : vector<8x8xf32>
    %12 = arith.truncf %11 : vector<8x8xf32> to vector<8x8xbf16>
    %c0_10 = arith.constant 0 : index
    %c0_11 = arith.constant 0 : index
    %13 = vector.load %arg8[%c0_10, %c0_11] : memref<8x384xbf16, #tpu.memory_space<vmem>>, vector<8x384xbf16>
    %cst_12 = arith.constant dense<0.000000e+00> : vector<8x384xf32>
    %14 = tpu.matmul %12, %13, %cst_12 {dimension_numbers = #tpu.dot_dimension_numbers<[1], [0], [0], [1], [0, 0, 1, 1], [], []>} : vector<8x8xbf16>, vector<8x384xbf16>, vector<8x384xf32> -> vector<8x384xf32>
    %15 = arith.subf %6, %14 : vector<8x384xf32>
    %16 = arith.mulf %15, %15 : vector<8x384xf32>
    %17 = arith.truncf %16 : vector<8x384xf32> to vector<8x384xbf16>
    %c0_13 = arith.constant 0 : index
    %c0_14 = arith.constant 0 : index
    %18 = vector.load %arg7[%c0_13, %c0_14] : memref<384x8xbf16, #tpu.memory_space<vmem>>, vector<384x8xbf16>
    %cst_15 = arith.constant dense<0.000000e+00> : vector<8x8xf32>
    %19 = tpu.matmul %17, %18, %cst_15 {dimension_numbers = #tpu.dot_dimension_numbers<[1], [0], [0], [1], [0, 0, 1, 1], [], []>} : vector<8x384xbf16>, vector<384x8xbf16>, vector<8x8xf32> -> vector<8x8xf32>
    %cst_16 = arith.constant 9.99999974E-6 : f32
    %20 = vector.broadcast %cst_16 : f32 to vector<8x8xf32>
    %21 = arith.addf %19, %20 : vector<8x8xf32>
    %22 = math.rsqrt %21 : vector<8x8xf32>
    %23 = arith.truncf %22 : vector<8x8xf32> to vector<8x8xbf16>
    %c0_17 = arith.constant 0 : index
    %c0_18 = arith.constant 0 : index
    %24 = vector.load %arg8[%c0_17, %c0_18] : memref<8x384xbf16, #tpu.memory_space<vmem>>, vector<8x384xbf16>
    %cst_19 = arith.constant dense<0.000000e+00> : vector<8x384xf32>
    %25 = tpu.matmul %23, %24, %cst_19 {dimension_numbers = #tpu.dot_dimension_numbers<[1], [0], [0], [1], [0, 0, 1, 1], [], []>} : vector<8x8xbf16>, vector<8x384xbf16>, vector<8x384xf32> -> vector<8x384xf32>
    %26 = arith.mulf %15, %25 : vector<8x384xf32>
    %c1 = arith.constant 1 : index
    %c0_20 = arith.constant 0 : index
    %27 = vector.load %arg6[%c1, %c0_20] : memref<3x384xf32, #tpu.memory_space<vmem>>, vector<1x384xf32>
    %28 = vector.broadcast %27 : vector<1x384xf32> to vector<8x384xf32>
    %29 = arith.mulf %26, %28 : vector<8x384xf32>
    %c2 = arith.constant 2 : index
    %c0_21 = arith.constant 0 : index
    %30 = vector.load %arg6[%c2, %c0_21] : memref<3x384xf32, #tpu.memory_space<vmem>>, vector<1x384xf32>
    %31 = vector.broadcast %30 : vector<1x384xf32> to vector<8x384xf32>
    %32 = arith.addf %29, %31 : vector<8x384xf32>
    %cst_22 = arith.constant 2.000000e+01 : f32
    %33 = vector.broadcast %cst_22 : f32 to vector<8x384xf32>
    %34 = arith.minimumf %32, %33 : vector<8x384xf32>
    %35 = math.exp %34 : vector<8x384xf32>
    %cst_23 = arith.constant 2.000000e+00 : f32
    %36 = vector.broadcast %cst_23 : f32 to vector<8x384xf32>
    %37 = arith.addf %35, %36 : vector<8x384xf32>
    %38 = arith.mulf %35, %37 : vector<8x384xf32>
    %cst_24 = arith.constant 2.000000e+00 : f32
    %39 = vector.broadcast %cst_24 : f32 to vector<8x384xf32>
    %40 = arith.addf %38, %39 : vector<8x384xf32>
    %41 = tpu.reciprocal %40 {approx = true} : vector<8x384xf32> -> vector<8x384xf32>
    %cst_25 = arith.constant 2.000000e+00 : f32
    %42 = vector.broadcast %cst_25 : f32 to vector<8x384xf32>
    %43 = arith.mulf %42, %41 : vector<8x384xf32>
    %cst_26 = arith.constant 1.000000e+00 : f32
    %44 = vector.broadcast %cst_26 : f32 to vector<8x384xf32>
    %45 = arith.subf %44, %43 : vector<8x384xf32>
    %cst_27 = arith.constant 2.000000e+01 : f32
    %46 = vector.broadcast %cst_27 : f32 to vector<8x384xf32>
    %47 = arith.cmpf ogt, %32, %46 : vector<8x384xf32>
    %48 = arith.mulf %32, %45 : vector<8x384xf32>
    %49 = arith.select %47, %32, %48 : vector<8x384xi1>, vector<8x384xf32>
    %50 = arith.truncf %49 : vector<8x384xf32> to vector<8x384xbf16>
    %c0_28 = arith.constant 0 : index
    %c0_29 = arith.constant 0 : index
    %51 = vector.load %arg9[%c0_28, %c0_29] : memref<384x256xbf16, #tpu.memory_space<vmem>>, vector<384x256xbf16>
    %cst_30 = arith.constant dense<0.000000e+00> : vector<8x256xf32>
    %52 = tpu.matmul %50, %51, %cst_30 {dimension_numbers = #tpu.dot_dimension_numbers<[1], [0], [0], [1], [0, 0, 1, 1], [], []>} : vector<8x384xbf16>, vector<384x256xbf16>, vector<8x256xf32> -> vector<8x256xf32>
    %c0_31 = arith.constant 0 : index
    %c0_32 = arith.constant 0 : index
    %53 = vector.load %arg11[%c0_31, %c0_32] : memref<3x256xf32, #tpu.memory_space<vmem>>, vector<1x256xf32>
    %54 = vector.broadcast %53 : vector<1x256xf32> to vector<8x256xf32>
    %55 = arith.addf %52, %54 : vector<8x256xf32>
    %c0_33 = arith.constant 0 : index
    %c0_34 = arith.constant 0 : index
    %56 = vector.load %arg10[%c0_33, %c0_34] : memref<384x8xbf16, #tpu.memory_space<vmem>>, vector<384x8xbf16>
    %cst_35 = arith.constant dense<0.000000e+00> : vector<8x8xf32>
    %57 = tpu.matmul %50, %56, %cst_35 {dimension_numbers = #tpu.dot_dimension_numbers<[1], [0], [0], [1], [0, 0, 1, 1], [], []>} : vector<8x384xbf16>, vector<384x8xbf16>, vector<8x8xf32> -> vector<8x8xf32>
    %c1_36 = arith.constant 1 : index
    %c0_37 = arith.constant 0 : index
    %58 = vector.load %arg19[%c1_36, %c0_37] : memref<2x8xf32, #tpu.memory_space<vmem>>, vector<1x8xf32>
    %59 = vector.broadcast %58 : vector<1x8xf32> to vector<8x8xf32>
    %60 = arith.addf %57, %59 : vector<8x8xf32>
    %61 = arith.truncf %60 : vector<8x8xf32> to vector<8x8xbf16>
    %c0_38 = arith.constant 0 : index
    %c0_39 = arith.constant 0 : index
    %62 = vector.load %arg13[%c0_38, %c0_39] : memref<8x256xbf16, #tpu.memory_space<vmem>>, vector<8x256xbf16>
    %cst_40 = arith.constant dense<0.000000e+00> : vector<8x256xf32>
    %63 = tpu.matmul %61, %62, %cst_40 {dimension_numbers = #tpu.dot_dimension_numbers<[1], [0], [0], [1], [0, 0, 1, 1], [], []>} : vector<8x8xbf16>, vector<8x256xbf16>, vector<8x256xf32> -> vector<8x256xf32>
    %64 = arith.subf %55, %63 : vector<8x256xf32>
    %65 = arith.mulf %64, %64 : vector<8x256xf32>
    %66 = arith.truncf %65 : vector<8x256xf32> to vector<8x256xbf16>
    %c0_41 = arith.constant 0 : index
    %c0_42 = arith.constant 0 : index
    %67 = vector.load %arg12[%c0_41, %c0_42] : memref<256x8xbf16, #tpu.memory_space<vmem>>, vector<256x8xbf16>
    %cst_43 = arith.constant dense<0.000000e+00> : vector<8x8xf32>
    %68 = tpu.matmul %66, %67, %cst_43 {dimension_numbers = #tpu.dot_dimension_numbers<[1], [0], [0], [1], [0, 0, 1, 1], [], []>} : vector<8x256xbf16>, vector<256x8xbf16>, vector<8x8xf32> -> vector<8x8xf32>
    %cst_44 = arith.constant 9.99999974E-6 : f32
    %69 = vector.broadcast %cst_44 : f32 to vector<8x8xf32>
    %70 = arith.addf %68, %69 : vector<8x8xf32>
    %71 = math.rsqrt %70 : vector<8x8xf32>
    %72 = arith.truncf %71 : vector<8x8xf32> to vector<8x8xbf16>
    %c0_45 = arith.constant 0 : index
    %c0_46 = arith.constant 0 : index
    %73 = vector.load %arg13[%c0_45, %c0_46] : memref<8x256xbf16, #tpu.memory_space<vmem>>, vector<8x256xbf16>
    %cst_47 = arith.constant dense<0.000000e+00> : vector<8x256xf32>
    %74 = tpu.matmul %72, %73, %cst_47 {dimension_numbers = #tpu.dot_dimension_numbers<[1], [0], [0], [1], [0, 0, 1, 1], [], []>} : vector<8x8xbf16>, vector<8x256xbf16>, vector<8x256xf32> -> vector<8x256xf32>
    %75 = arith.mulf %64, %74 : vector<8x256xf32>
    %c1_48 = arith.constant 1 : index
    %c0_49 = arith.constant 0 : index
    %76 = vector.load %arg11[%c1_48, %c0_49] : memref<3x256xf32, #tpu.memory_space<vmem>>, vector<1x256xf32>
    %77 = vector.broadcast %76 : vector<1x256xf32> to vector<8x256xf32>
    %78 = arith.mulf %75, %77 : vector<8x256xf32>
    %c2_50 = arith.constant 2 : index
    %c0_51 = arith.constant 0 : index
    %79 = vector.load %arg11[%c2_50, %c0_51] : memref<3x256xf32, #tpu.memory_space<vmem>>, vector<1x256xf32>
    %80 = vector.broadcast %79 : vector<1x256xf32> to vector<8x256xf32>
    %81 = arith.addf %78, %80 : vector<8x256xf32>
    %82 = arith.truncf %81 : vector<8x256xf32> to vector<8x256xbf16>
    %c0_52 = arith.constant 0 : index
    %c0_53 = arith.constant 0 : index
    %83 = vector.load %arg14[%c0_52, %c0_53] : memref<256x16xbf16, #tpu.memory_space<vmem>>, vector<256x16xbf16>
    %cst_54 = arith.constant dense<0.000000e+00> : vector<8x16xf32>
    %84 = tpu.matmul %82, %83, %cst_54 {dimension_numbers = #tpu.dot_dimension_numbers<[1], [0], [0], [1], [0, 0, 1, 1], [], []>} : vector<8x256xbf16>, vector<256x16xbf16>, vector<8x16xf32> -> vector<8x16xf32>
    %c0_55 = arith.constant 0 : index
    %c0_56 = arith.constant 0 : index
    %85 = vector.load %arg2[%c0_55, %c0_56] : memref<8x36xf32, #tpu.memory_space<vmem>>, vector<8x36xf32>
    %c0_57 = arith.constant 0 : index
    %c0_58 = arith.constant 0 : index
    %86 = vector.load %arg15[%c0_57, %c0_58] : memref<36x16xf32, #tpu.memory_space<vmem>>, vector<36x16xf32>
    %cst_59 = arith.constant dense<0.000000e+00> : vector<8x16xf32>
    %87 = tpu.matmul %85, %86, %cst_59 {dimension_numbers = #tpu.dot_dimension_numbers<[1], [0], [0], [1], [0, 0, 1, 1], [], []>} : vector<8x36xf32>, vector<36x16xf32>, vector<8x16xf32> -> vector<8x16xf32>
    %88 = arith.addf %84, %87 : vector<8x16xf32>
    %c0_60 = arith.constant 0 : index
    %c0_61 = arith.constant 0 : index
    %89 = vector.load %arg16[%c0_60, %c0_61] : memref<1x16xf32, #tpu.memory_space<vmem>>, vector<1x16xf32>
    %90 = vector.broadcast %89 : vector<1x16xf32> to vector<8x16xf32>
    %91 = arith.addf %88, %90 : vector<8x16xf32>
    %c0_62 = arith.constant 0 : index
    %c0_63 = arith.constant 0 : index
    %92 = vector.load %arg17[%c0_62, %c0_63] : memref<16x32xf32, #tpu.memory_space<vmem>>, vector<16x32xf32>
    %cst_64 = arith.constant dense<0.000000e+00> : vector<8x32xf32>
    %93 = tpu.matmul %91, %92, %cst_64 {dimension_numbers = #tpu.dot_dimension_numbers<[1], [0], [0], [1], [0, 0, 1, 1], [], []>} : vector<8x16xf32>, vector<16x32xf32>, vector<8x32xf32> -> vector<8x32xf32>
    %c0_65 = arith.constant 0 : index
    %c0_66 = arith.constant 0 : index
    %94 = vector.load %arg18[%c0_65, %c0_66] : memref<1x32xf32, #tpu.memory_space<vmem>>, vector<1x32xf32>
    %95 = vector.broadcast %94 : vector<1x32xf32> to vector<8x32xf32>
    %96 = arith.addf %93, %95 : vector<8x32xf32>
    %97 = vector.extract_strided_slice %96 {offsets = [0, 0], sizes = [8, 16], strides = [1, 1]} : vector<8x32xf32> to vector<8x16xf32>
    %98 = vector.extract_strided_slice %96 {offsets = [0, 16], sizes = [8, 16], strides = [1, 1]} : vector<8x32xf32> to vector<8x16xf32>
    %99 = math.exp %98 : vector<8x16xf32>
    %c0_67 = arith.constant 0 : index
    %c0_68 = arith.constant 0 : index
    %100 = vector.load %arg3[%c0_67, %c0_68] : memref<8x16xf32, #tpu.memory_space<vmem>>, vector<8x16xf32>
    %101 = arith.mulf %99, %100 : vector<8x16xf32>
    %102 = arith.addf %97, %101 : vector<8x16xf32>
    %c0_69 = arith.constant 0 : index
    %c0_70 = arith.constant 0 : index
    %103 = vector.load %arg20[%c0_69, %c0_70] : memref<8x32xf32, #tpu.memory_space<vmem>>, vector<8x16xf32>
    tpu.vector_store %arg20[%c0_69, %c0_70], %102 {strides = array<i32>} : memref<8x32xf32, #tpu.memory_space<vmem>>, vector<8x16xf32>,
    %104 = arith.mulf %99, %99 : vector<8x16xf32>
    %105 = arith.mulf %97, %97 : vector<8x16xf32>
    %106 = arith.addf %104, %105 : vector<8x16xf32>
    %107 = arith.subf %106, %98 : vector<8x16xf32>
    %cst_71 = arith.constant 5.000000e-01 : f32
    %108 = vector.broadcast %cst_71 : f32 to vector<8x16xf32>
    %109 = arith.subf %107, %108 : vector<8x16xf32>
    %c0_72 = arith.constant 0 : index
    %c16 = arith.constant 16 : index
    %110 = vector.load %arg20[%c0_72, %c16] : memref<8x32xf32, #tpu.memory_space<vmem>>, vector<8x16xf32>
    tpu.vector_store %arg20[%c0_72, %c16], %109 {strides = array<i32>} : memref<8x32xf32, #tpu.memory_space<vmem>>, vector<8x16xf32>,
    return
  }
  func.func @transform_0(%arg0: i32) -> (i32, i32) {
    %c0_i32 = arith.constant 0 : i32
    %c0_i32_0 = arith.constant 0 : i32
    return %arg0, %c0_i32 : i32, i32
  }
  func.func @transform_1(%arg0: i32) -> (i32, i32) {
    %c0_i32 = arith.constant 0 : i32
    %c0_i32_0 = arith.constant 0 : i32
    return %arg0, %c0_i32 : i32, i32
  }
  func.func @transform_2(%arg0: i32) -> (i32, i32) {
    %c0_i32 = arith.constant 0 : i32
    %c0_i32_0 = arith.constant 0 : i32
    return %arg0, %c0_i32 : i32, i32
  }
  func.func @transform_3(%arg0: i32) -> (i32, i32) {
    %c0_i32 = arith.constant 0 : i32
    %c0_i32_0 = arith.constant 0 : i32
    %c0_i32_1 = arith.constant 0 : i32
    return %c0_i32, %c0_i32_0 : i32, i32
  }
  func.func @transform_4(%arg0: i32) -> (i32, i32) {
    %c0_i32 = arith.constant 0 : i32
    %c0_i32_0 = arith.constant 0 : i32
    %c0_i32_1 = arith.constant 0 : i32
    return %c0_i32, %c0_i32_0 : i32, i32
  }
  func.func @transform_5(%arg0: i32) -> (i32, i32) {
    %c0_i32 = arith.constant 0 : i32
    %c0_i32_0 = arith.constant 0 : i32
    %c0_i32_1 = arith.constant 0 : i32
    return %c0_i32, %c0_i32_0 : i32, i32
  }
  func.func @transform_6(%arg0: i32) -> (i32, i32) {
    %c0_i32 = arith.constant 0 : i32
    %c0_i32_0 = arith.constant 0 : i32
    %c0_i32_1 = arith.constant 0 : i32
    return %c0_i32, %c0_i32_0 : i32, i32
  }
  func.func @transform_7(%arg0: i32) -> (i32, i32) {
    %c0_i32 = arith.constant 0 : i32
    %c0_i32_0 = arith.constant 0 : i32
    %c0_i32_1 = arith.constant 0 : i32
    return %c0_i32, %c0_i32_0 : i32, i32
  }
  func.func @transform_8(%arg0: i32) -> (i32, i32) {
    %c0_i32 = arith.constant 0 : i32
    %c0_i32_0 = arith.constant 0 : i32
    %c0_i32_1 = arith.constant 0 : i32
    return %c0_i32, %c0_i32_0 : i32, i32
  }
  func.func @transform_9(%arg0: i32) -> (i32, i32) {
    %c0_i32 = arith.constant 0 : i32
    %c0_i32_0 = arith.constant 0 : i32
    %c0_i32_1 = arith.constant 0 : i32
    return %c0_i32, %c0_i32_0 : i32, i32
  }
  func.func @transform_10(%arg0: i32) -> (i32, i32) {
    %c0_i32 = arith.constant 0 : i32
    %c0_i32_0 = arith.constant 0 : i32
    %c0_i32_1 = arith.constant 0 : i32
    return %c0_i32, %c0_i32_0 : i32, i32
  }
  func.func @transform_11(%arg0: i32) -> (i32, i32) {
    %c0_i32 = arith.constant 0 : i32
    %c0_i32_0 = arith.constant 0 : i32
    %c0_i32_1 = arith.constant 0 : i32
    return %c0_i32, %c0_i32_0 : i32, i32
  }
  func.func @transform_12(%arg0: i32) -> (i32, i32) {
    %c0_i32 = arith.constant 0 : i32
    %c0_i32_0 = arith.constant 0 : i32
    %c0_i32_1 = arith.constant 0 : i32
    return %c0_i32, %c0_i32_0 : i32, i32
  }
  func.func @transform_13(%arg0: i32) -> (i32, i32) {
    %c0_i32 = arith.constant 0 : i32
    %c0_i32_0 = arith.constant 0 : i32
    %c0_i32_1 = arith.constant 0 : i32
    return %c0_i32, %c0_i32_0 : i32, i32
  }
  func.func @transform_14(%arg0: i32) -> (i32, i32) {
    %c0_i32 = arith.constant 0 : i32
    %c0_i32_0 = arith.constant 0 : i32
    %c0_i32_1 = arith.constant 0 : i32
    return %c0_i32, %c0_i32_0 : i32, i32
  }
  func.func @transform_15(%arg0: i32) -> (i32, i32) {
    %c0_i32 = arith.constant 0 : i32
    %c0_i32_0 = arith.constant 0 : i32
    %c0_i32_1 = arith.constant 0 : i32
    return %c0_i32, %c0_i32_0 : i32, i32
  }
  func.func @transform_16(%arg0: i32) -> (i32, i32) {
    %c0_i32 = arith.constant 0 : i32
    %c0_i32_0 = arith.constant 0 : i32
    %c0_i32_1 = arith.constant 0 : i32
    return %c0_i32, %c0_i32_0 : i32, i32
  }
  func.func @transform_17(%arg0: i32) -> (i32, i32) {
    %c0_i32 = arith.constant 0 : i32
    %c0_i32_0 = arith.constant 0 : i32
    %c0_i32_1 = arith.constant 0 : i32
    return %c0_i32, %c0_i32_0 : i32, i32
  }
  func.func @transform_18(%arg0: i32) -> (i32, i32) {
    %c0_i32 = arith.constant 0 : i32
    %c0_i32_0 = arith.constant 0 : i32
    %c0_i32_1 = arith.constant 0 : i32
    return %c0_i32, %c0_i32_0 : i32, i32
  }
  func.func @transform_19(%arg0: i32) -> (i32, i32) {
    %c0_i32 = arith.constant 0 : i32
    %c0_i32_0 = arith.constant 0 : i32
    return %arg0, %c0_i32 : i32, i32
  }
}

</mosaic_0001>

<bundles_post_ra>
// kernel: encoder_forward.1
= control target key start
LH: loop header
LB: loop body
LE: loop exit
PB: predicated region body
PF: predicated region fallthrough
CT: control target
= control target key end

     0   :  { %s4232_s0 = inlined_call_operand.vmem [shape: f32[16,44], index: 0, kind: input, shape index: {}]   ;;  %s4233_s1 = inlined_call_operand.vmem [shape: f32[16,36], index: 1, kind: input, shape index: {}]   ;;  %s4234_s2 = inlined_call_operand.vmem [shape: f32[16,16], index: 2, kind: input, shape index: {}]   ;;  %s4235_s3 = inlined_call_operand.vmem [shape: bf16[44,384], index: 3, kind: input, shape index: {}]   ;;  %s4236_s4 = inlined_call_operand.vmem [shape: bf16[44,8], index: 4, kind: input, shape index: {}]   ;;  %s4237_s5 = inlined_call_operand.vmem [shape: f32[3,384], index: 5, kind: input, shape index: {}]   ;;  %s4238_s6 = inlined_call_operand.vmem [shape: bf16[384,8], index: 6, kind: input, shape index: {}]   ;;  %s4239_s7 = inlined_call_operand.vmem [shape: bf16[8,384], index: 7, kind: input, shape index: {}]   ;;  %s4240_s8 = inlined_call_operand.vmem [shape: bf16[384,256], index: 8, kind: input, shape index: {}]   ;;  %s4241_s9 = inlined_call_operand.vmem [shape: bf16[384,8], index: 9, kind: input, shape index: {}]   ;;  %s4242_s10 = inlined_call_operand.vmem [shape: f32[3,256], index: 10, kind: input, shape index: {}]   ;;  %s4243_s11 = inlined_call_operand.vmem [shape: bf16[256,8], index: 11, kind: input, shape index: {}]   ;;  %s4244_s12 = inlined_call_operand.vmem [shape: bf16[8,256], index: 12, kind: input, shape index: {}]   ;;  %s4245_s13 = inlined_call_operand.vmem [shape: bf16[256,16], index: 13, kind: input, shape index: {}]   ;;  %s4246_s14 = inlined_call_operand.vmem [shape: f32[36,16], index: 14, kind: input, shape index: {}]   ;;  %s4247_s15 = inlined_call_operand.vmem [shape: f32[1,16], index: 15, kind: input, shape index: {}]   ;;  %s4248_s16 = inlined_call_operand.vmem [shape: f32[16,32], index: 16, kind: input, shape index: {}]   ;;  %s4249_s17 = inlined_call_operand.vmem [shape: f32[1,32], index: 17, kind: input, shape index: {}]   ;;  %s4250_s18 = inlined_call_operand.vmem [shape: f32[2,8], index: 18, kind: input, shape index: {}]   ;;  %s4251_s19 = inlined_call_operand.vmem [shape: f32[16,32], index: 19, kind: output, shape index: {}]  }
   0x1   :  { %4253 = sst [smem:[#allocation2_spill]] %s4232_s0  ;;  %s3580_s0 = smov 0  }
   0x2   :  { %4254 = sst [smem:[#allocation3_spill]] %s4233_s1 }
   0x3   :  { %4255 = sst [smem:[#allocation4_spill]] %s4234_s2 }
   0x4   :  { %4256 = sst [smem:[#allocation5_spill]] %s4235_s3 }
   0x5 LB: > { %s2846_s30 = sadd.s32 4294967295, %s3472_s0   ;;  %p2850_p0 = scmp.ge.s32.totalorder %s3472_s0, 1  ;;  %s3472_s0 = sphi %s3580_s0, %s29_s0  }
   0x6   : > { %p554_p1 = scmp.lt.s32.totalorder %s3472_s0, 3 }
   0x8   : > { %p555_p2 = pnand %p2850_p0, %p554_p1 }
   0x9   : > { %s4257_s1 = sld [smem:[#allocation5_spill]] (!%p555_p2)  ;;  %v3474_v2 = vmov (!%p555_p2), 0   ;;  %p616_p3 = scmp.lt.s32.totalorder (!%p555_p2), %s2846_s30, 1  ;;  %vm713_vm0 = vcmask (!%p555_p2), 1045504   ;;  %vm709_vm1 = vcmask (!%p555_p2), 359424   ;;  %v3475_v12 = vmov (!%p555_p2), 0.0  }
   0xa   : > { %558 = sbr.rel (%p555_p2) target bundleno = 2469 (0x9a5), region = 96  ;;  %755 = vmatprep.mubr.bf16.mxu0 (!%p555_p2), %v3474_v2  ;;  %932 = vmatprep.mubr.bf16.mxu1 (!%p555_p2), %v3474_v2  ;;  %s4258_s2 = sld [smem:[#allocation2_spill]] (!%p555_p2)  ;;  %vm3476_vm2 = vmmov (!%p555_p2), 0   ;;  %v3288_v15 = vld [vmem:[%s4236_s4] sm:$0xff] (!%p555_p2)   ;;  %v3289_v16 = vld [vmem:[%s4236_s4 + $0x8] sm:$0xff] (!%p555_p2)   ;;  %vm890_vm3 = vcmask (!%p555_p2), 1043456  }
   0xb   : > { %v3290_v17 = vld [vmem:[%s4236_s4 + $0x10] sm:$0x3f] (!%p555_p2)   ;;  %v876_v19 = vld [vmem:[%s4239_s7] sm:$0xff] (!%p555_p2)  ;;  %v3296_v25 = vld [vmem:[%s4238_s6 + $0x48] sm:$0xff] (!%p555_p2)   ;;  %vm886_vm4 = vcmask (!%p555_p2), 64512   ;;  %vm2440_vm8 = vcmask (!%p555_p2), 293888  }
   0xc   : > { %v833_v18 = vsel (!%p555_p2), %vm713_vm0, %v3290_v17, 0  ;;  %v3652_v20 = vcombine.high (!%p555_p2), %v876_v19, %v876_v19  ;;  %v2872_v21 = vcombine.low (!%p555_p2), %v876_v19, %v876_v19  ;;  %v3294_v23 = vld [vmem:[%s4238_s6 + $0x40] sm:$0xff] (!%p555_p2)   ;;  %v3297_v26 = vld [vmem:[%s4238_s6 + $0x8] sm:$0xff] (!%p555_p2)   ;;  %v3299_v27 = vld [vmem:[%s4238_s6 + $0x50] sm:$0xff] (!%p555_p2)   ;;  %s3478_s24 = smov (!%p555_p2), 16   ;;  %vm2670_vm9 = vcmask (!%p555_p2), 130048  }
   0xd   : > { %v3295_v24 = vld [vmem:[%s4238_s6] sm:$0xff] (!%p555_p2)   ;;  %v3300_v28 = vld [vmem:[%s4238_s6 + $0x10] sm:$0xff] (!%p555_p2)   ;;  %v3302_v29 = vld [vmem:[%s4238_s6 + $0x58] sm:$0xff] (!%p555_p2)   ;;  %s3479_s27 = smov (!%p555_p2), 112   ;;  %vm2767_vm10 = vcmask (!%p555_p2), 261248  }
   0xe   : > { %2875 = vmatprep.subr.msk.bf16.mxu1 (!%p555_p2), %vm890_vm3, %v3652_v20  ;;  %v3657_v22 = vsel (!%p555_p2), %vm890_vm3, %v2872_v21, 0  ;;  %v3303_v30 = vld [vmem:[%s4238_s6 + $0x18] sm:$0xff] (!%p555_p2)   ;;  %v3305_v31 = vld [vmem:[%s4238_s6 + $0x60] sm:$0xff] (!%p555_p2)   ;;  %v3308_v33 = vld [vmem:[%s4238_s6 + $0x68] sm:$0xff] (!%p555_p2)  }
   0xf   : > { %v3276_v0 = vld [vmem:[%s4257_s1 + $0x4] ss:$12 sps:$4 sm:$0xff] (!%p555_p2)   ;;  %v3278_v1 = vld [vmem:[%s4257_s1] ss:$12 sps:$4 sm:$0xff] (!%p555_p2)   ;;  %v3279_v3 = vld [vmem:[%s4257_s1 + $0x1c] ss:$12 sps:$4 sm:$0xff] (!%p555_p2)   ;;  %901 = vmatpush1.bf16.msra.mxu1 (!%p555_p2), %v3657_v22 }
  0x10   : > { %723 = vmatprep.subr.bf16.mxu0 (!%p555_p2), %v3276_v0  ;;  %v3281_v4 = vld [vmem:[%s4257_s1 + $0x18] ss:$12 sps:$4 sm:$0xff] (!%p555_p2)   ;;  %v3282_v5 = vld [vmem:[%s4257_s1 + $0x34] ss:$12 sps:$4 sm:$0x3f] (!%p555_p2)   ;;  %3175 = vmatprep.subr.bf16.mxu1 (!%p555_p2), %v3475_v12  ;;  %v3309_v34 = vld [vmem:[%s4238_s6 + $0x28] sm:$0xff] (!%p555_p2)   ;;  %v649_v0 = vlaneseq (!%p555_p2) }
  0x11   : > { %724 = vmatpush1.bf16.msra.mxu0 %v3278_v1  ;;  %s4262_s30 = smov (!%p616_p3, %s2846_s30), 1  ;;  %v3284_v6 = vld [vmem:[%s4257_s1 + $0x30] ss:$12 sps:$4 sm:$0x3f]   ;;  %v3285_v11 = vld [vmem:[%s4257_s1 + $0x8] ss:$12 sps:$4 sm:$0xff]  }
  0x12   : > { %725 = vmatprep.subr.bf16.mxu0 %v3279_v3  ;;  %s3608_s20 = sshll.u32 %s4262_s30, 3  ;;  %v715_v7 = vsel %vm713_vm0, %v3284_v6, 0  ;;  %v3287_v9 = vld [vmem:[%s4257_s1 + $0x38] ss:$12 sps:$4 sm:$0x3f]   ;;  %v3301_v53 = vld [vmem:[%s4238_s6 + $0x88] sm:$0xff]  }
  0x13   : > { %s619_s23 = scalar_lea.vmem %s4258_s2, %s3608_s20  ;;  %v3286_v13 = vld [vmem:[%s4257_s1 + $0x20] ss:$12 sps:$4 sm:$0xff]   ;;  %v721_v14 = vsel %vm713_vm0, %v3287_v9, 0  ;;  %v3293_v44 = vld [vmem:[%s4239_s7 + $0x8] ss:$0 sps:$4 sm:$0xff]   ;;  %v3304_v54 = vld [vmem:[%s4238_s6 + $0x90] sm:$0xff]   ;;  %s631_s21 = scalar_lea.vmem %s4251_s19, %s3608_s20 }
  0x14   : > { %v633_v8 = vld [vmem:[%s619_s23] sm:$0xff]  ;;  %v3710_v51 = vsel %vm890_vm3, %v3293_v44, 0  ;;  %v3307_v55 = vld [vmem:[%s4238_s6 + $0x98] sm:$0xff]   ;;  %v3311_v57 = vld [vmem:[%s4238_s6 + $0x70] sm:$0xff]   ;;  %v650_v1 = vshrl.u32 %v649_v0, 7  ;;  %s4259_s2 = sld [smem:[#allocation3_spill]] }
  0x15   : > { %726 = vmatpush1.bf16.msra.mxu0 %v3281_v4  ;;  %v634_v10 = vpack.c.bf16 %v633_v8, %v633_v8  ;;  %v3306_v32 = vld [vmem:[%s4238_s6 + $0x20] sm:$0xff]   ;;  %v3312_v58 = vld [vmem:[%s4238_s6 + $0x30] sm:$0xff]   ;;  %v3313_v59 = vld [vmem:[%s4238_s6 + $0xa8] sm:$0xff]  }
  0x16   : > { %2864 = vmatprep.subr.msk.bf16.mxu0 %vm713_vm0, %v3282_v5  ;;  %v2867_v43 = vld [vmem:[%s4250_s18] ss:$0 sm:$0xff]  ;;  %v3314_v60 = vld [vmem:[%s4238_s6 + $0x78] sm:$0xff]   ;;  %v3316_v62 = vld [vmem:[%s4238_s6 + $0xb0] sm:$0xff]   ;;  %v3766_v3 = vsub.s32 0, %v650_v1  ;;  %v3771_v5 = vsub.s32 1, %v650_v1 }
  0x17   : > { %v3298_v52 = vld [vmem:[%s4238_s6 + $0x80] sm:$0xff]   ;;  %v3315_v61 = vld [vmem:[%s4238_s6 + $0x38] sm:$0xff]   ;;  %v3776_v9 = vsub.s32 2, %v650_v1  ;;  %v3350_v0 = vld [vmem:[%s4241_s9 + $0x48] sm:$0xff]  }
  0x18   : > { %v3310_v56 = vld [vmem:[%s4238_s6 + $0xa0] sm:$0xff]   ;;  %v3317_v63 = vld [vmem:[%s4238_s6 + $0xb8] sm:$0xff]  }
  0x19   : > { %728 = vmatpush1.bf16.msra.mxu0 %v715_v7  ;;  %v647_v4 = vld [vmem:[%s4237_s5] ss:$4 sm:$0x7]  ;;  %v3349_v1 = vld [vmem:[%s4240_s8 + $0x94] ss:$8 sps:$4 sm:$0xff]  }
  0x1a   : > { %3155 = vmatprep.subr.bf16.mxu0 %v3475_v12  ;;  %v652_v6 = vrot.slane %v647_v4, %v3766_v3  ;;  %v656_v7 = vrot.slane %v647_v4, %v3771_v5  ;;  %v660_v17 = vrot.slane %v647_v4, %v3776_v9  ;;  %v3318_v44 = vld [vmem:[%s4240_s8] ss:$8 sps:$4 sm:$0xff]   ;;  %s623_s23 = scalar_lea.vmem %s4259_s2, %s3608_s20  ;;  %s4260_s2 = sld [smem:[#allocation4_spill]] }
  0x1b   : > { %v3351_v4 = vld [vmem:[%s4241_s9 + $0x8] sm:$0xff]  }
  0x1c   : > { %2865 = vmatmul.mubr.msk.bf16.vlgmr.msra.gmra.mrb[0].mxu0 %vm709_vm1, %v634_v10 }
  0x1d   : > { %3156 = vmatpush3.bf16.msra.mxu0 %v3285_v11  ;;  %3161 = vmatprep.mubr.msk.bf16.mxu0 %vm3476_vm2, %v3475_v12 }
  0x1e   : > { %3157 = vmatprep.subr.bf16.mxu0 %v3475_v12 }
  0x21   : > { %3158 = vmatpush3.bf16.msra.mxu0 %v3286_v13 }
  0x22   : > { %3159 = vmatprep.subr.bf16.mxu0 %v3475_v12 }
  0x25   : > { %3160 = vmatpush3.bf16.msra.mxu0 %v721_v14 }
  0x26   : > { %3165 = vmatprep.subr.bf16.mxu0 %v3475_v12 }
  0x28   : > { %3162 = vmatmul.mubr.msk.bf16.vlgmr.msra.gmra.mrb[4].mxu0 %vm709_vm1, %v634_v10 }
  0x29   : > { %3166 = vmatpush3.bf16.msra.mxu0 %v3288_v15  ;;  %3171 = vmatprep.mubr.msk.bf16.mxu0 %vm3476_vm2, %v3475_v12 }
  0x2a   : > { %3167 = vmatprep.subr.bf16.mxu0 %v3475_v12 }
  0x2d   : > { %3168 = vmatpush3.bf16.msra.mxu0 %v3289_v16 }
  0x2e   : > { %3169 = vmatprep.subr.bf16.mxu0 %v3475_v12 }
  0x31   : > { %3170 = vmatpush3.bf16.msra.mxu0 %v833_v18 }
  0x32   : > { %3038 = vmatprep.subr.bf16.mxu0 %v3294_v23 }
  0x34   : > { %3172 = vmatmul.mubr.msk.bf16.vlgmr.msra.gmra.mrb[8].mxu0 %vm709_vm1, %v634_v10 }
  0x35   : > { %3039 = vmatpush3.bf16.msra.mxu0 %v3295_v24 }
  0x36   : > { %3040 = vmatprep.subr.bf16.mxu0 %v3296_v25 }
  0x39   : > { %3041 = vmatpush3.bf16.msra.mxu0 %v3297_v26 }
  0x3a   : > { %3042 = vmatprep.subr.bf16.mxu0 %v3299_v27 }
  0x3d   : > { %3043 = vmatpush3.bf16.msra.mxu0 %v3300_v28 }
  0x3e   : > { %3044 = vmatprep.subr.bf16.mxu0 %v3302_v29 }
  0x41   : > { %3045 = vmatpush3.bf16.msra.mxu0 %v3303_v30 }
  0x42   : > { %3046 = vmatprep.subr.bf16.mxu0 %v3305_v31 }
  0x45   : > { %3047 = vmatpush3.bf16.msra.mxu0 %v3306_v32  ;;  %v3320_v32 = vld [vmem:[%s4240_s8 + $0x4] ss:$8 sps:$4 sm:$0xff]  }
  0x46   : > { %3048 = vmatprep.subr.bf16.mxu0 %v3308_v33 }
  0x49   : > { %3049 = vmatpush3.bf16.msra.mxu0 %v3309_v34 }
  0x4a   : > { %3050 = vmatprep.subr.bf16.mxu0 %v3311_v57  ;;  %v3336_v57 = vld [vmem:[%s4240_s8 + $0x60] ss:$8 sps:$4 sm:$0xff]  }
  0x4d   : > { %3051 = vmatpush3.bf16.msra.mxu0 %v3312_v58  ;;  %v3341_v58 = vld [vmem:[%s4240_s8 + $0x74] ss:$8 sps:$4 sm:$0xff]  }
  0x4e   : > { %3052 = vmatprep.subr.bf16.mxu0 %v3314_v60  ;;  %v3344_v60 = vld [vmem:[%s4240_s8 + $0x84] ss:$8 sps:$4 sm:$0xff]  }
  0x51   : > { %3053 = vmatpush3.bf16.msra.mxu0 %v3315_v61  ;;  %v3345_v61 = vld [vmem:[%s4241_s9 + $0x40] sm:$0xff]  }
  0x52   : > { %2902 = vmatprep.subr.msk.bf16.mxu0 %vm890_vm3, %v3652_v20 }
  0xef   : > { %v3697_v35 = vpop.f32.mrb[0].mxu0 }
  0xf0   : > { %v3699_v36 = vpop.f32.mrb[1].mxu0  ;;  %v758_v8 = vadd.f32 %v3697_v35, %v652_v6  ;;  %v3355_v6 = vld [vmem:[%s4241_s9 + $0x50] sm:$0xff]  }
  0xf1   : > { %v761_v37 = vpop.f32.mrb[2].mxu0  ;;  %v760_v10 = vadd.f32 %v3699_v36, %v656_v7  ;;  %v3347_v7 = vld [vmem:[%s4240_s8 + $0x90] ss:$8 sps:$4 sm:$0xff]  }
  0xf2   : > { %v762_v38 = vpop.f32.mrb[3].mxu0 }
  0xfb   : > { %v3701_v39 = vpop.f32.mrb[4].mxu0 }
  0xfc   : > { %v3163_v40 = vpop.f32.mrb[5].mxu0  ;;  %v799_v23 = vadd.f32 %v3701_v39, %v660_v17  ;;  %v3361_v17 = vld [vmem:[%s4241_s9 + $0x18] sm:$0xff]  }
  0xfd   : > { %v801_v41 = vpop.f32.mrb[6].mxu0 }
  0xfe   : > { %v3164_v42 = vpop.f32.mrb[7].mxu0 }
 0x107   : > { %v869_v45 = vpop.f32.mrb[8].mxu0 }
 0x108   : > { %v870_v46 = vadd.f32 %v2867_v43, %v869_v45  ;;  %v3173_v47 = vpop.f32.mrb[9].mxu0 }
 0x109   : > { %v872_v48 = vpop.f32.mrb[10].mxu0  ;;  %v3321_v47 = vld [vmem:[%s4240_s8 + $0x10] ss:$8 sps:$4 sm:$0xff]  }
 0x10a   : > { %v875_v49 = vpack.c.bf16 %v870_v46, %v870_v46  ;;  %v3174_v50 = vpop.f32.mrb[11].mxu0  ;;  %v3323_v46 = vld [vmem:[%s4240_s8 + $0x14] ss:$8 sps:$4 sm:$0xff]   ;;  %v3326_v48 = vld [vmem:[%s4240_s8 + $0x24] ss:$8 sps:$4 sm:$0xff]  }
 0x10b   : > { %v3329_v50 = vld [vmem:[%s4240_s8 + $0x34] ss:$8 sps:$4 sm:$0xff]  }
 0x10c   : > { %2876 = vmatmul.mubr.msk.bf16.vlgmr.msra.gmra.mrb[0].mxu1 %vm886_vm4, %v875_v49 }
 0x10d   : > { %3176 = vmatpush3.bf16.msra.mxu1 %v3710_v51  ;;  %3177 = vmatprep.mubr.msk.bf16.mxu1 %vm3476_vm2, %v3475_v12 }
 0x10e   : > { %3181 = vmatprep.subr.bf16.mxu1 %v3475_v12 }
 0x114   : > { %3178 = vmatmul.mubr.msk.bf16.vlgmr.msra.gmra.mrb[4].mxu1 %vm886_vm4, %v875_v49  ;;  %v3324_v49 = vld [vmem:[%s4240_s8 + $0x20] ss:$8 sps:$4 sm:$0xff]  }
 0x115   : > { %3182 = vmatpush3.bf16.msra.mxu1 %v3298_v52  ;;  %3197 = vmatprep.mubr.msk.bf16.mxu1 %vm3476_vm2, %v3475_v12  ;;  %v3332_v52 = vld [vmem:[%s4240_s8 + $0x44] ss:$8 sps:$4 sm:$0xff]  }
 0x116   : > { %3183 = vmatprep.subr.bf16.mxu1 %v3475_v12 }
 0x119   : > { %3184 = vmatpush3.bf16.msra.mxu1 %v3301_v53  ;;  %v3330_v53 = vld [vmem:[%s4240_s8 + $0x40] ss:$8 sps:$4 sm:$0xff]  }
 0x11a   : > { %3185 = vmatprep.subr.bf16.mxu1 %v3475_v12 }
 0x11d   : > { %3186 = vmatpush3.bf16.msra.mxu1 %v3304_v54  ;;  %v3335_v54 = vld [vmem:[%s4240_s8 + $0x54] ss:$8 sps:$4 sm:$0xff]  }
 0x11e   : > { %3187 = vmatprep.subr.bf16.mxu1 %v3475_v12 }
 0x121   : > { %3188 = vmatpush3.bf16.msra.mxu1 %v3307_v55  ;;  %v3333_v55 = vld [vmem:[%s4240_s8 + $0x50] ss:$8 sps:$4 sm:$0xff]  }
 0x122   : > { %3189 = vmatprep.subr.bf16.mxu1 %v3475_v12 }
 0x125   : > { %3190 = vmatpush3.bf16.msra.mxu1 %v3310_v56  ;;  %v3338_v56 = vld [vmem:[%s4240_s8 + $0x64] ss:$8 sps:$4 sm:$0xff]  }
 0x126   : > { %3191 = vmatprep.subr.bf16.mxu1 %v3475_v12 }
 0x129   : > { %3192 = vmatpush3.bf16.msra.mxu1 %v3313_v59  ;;  %v3339_v59 = vld [vmem:[%s4240_s8 + $0x70] ss:$8 sps:$4 sm:$0xff]  }
 0x12a   : > { %3193 = vmatprep.subr.bf16.mxu1 %v3475_v12 }
 0x12d   : > { %3194 = vmatpush3.bf16.msra.mxu1 %v3316_v62  ;;  %v3346_v62 = vld [vmem:[%s4241_s9] sm:$0xff]  }
 0x12e   : > { %3195 = vmatprep.subr.bf16.mxu1 %v3475_v12 }
 0x131   : > { %3196 = vmatpush3.bf16.msra.mxu1 %v3317_v63  ;;  %v3342_v63 = vld [vmem:[%s4240_s8 + $0x80] ss:$8 sps:$4 sm:$0xff]  }
 0x132   : > { %3201 = vmatprep.subr.bf16.mxu1 %v3475_v12 }
 0x1df   : > { %v934_v11 = vpop.f32.mrb[0].mxu1 }
 0x1e0   : > { %v3779_v13 = vsub.f32 %v758_v8, %v934_v11  ;;  %v936_v14 = vpop.f32.mrb[1].mxu1  ;;  %v3354_v8 = vld [vmem:[%s4240_s8 + $0xa4] ss:$8 sps:$4 sm:$0xff]   ;;  %v3360_v11 = vld [vmem:[%s4241_s9 + $0x58] sm:$0xff]  }
 0x1e1   : > { %v3781_v15 = vsub.f32 %v760_v10, %v936_v14  ;;  %v938_v16 = vpop.f32.mrb[2].mxu1  ;;  %v3356_v10 = vld [vmem:[%s4241_s9 + $0x10] sm:$0xff]   ;;  %v3352_v14 = vld [vmem:[%s4240_s8 + $0xa0] ss:$8 sps:$4 sm:$0xff]  }
 0x1e2   : > { %v984_v18 = vmul.f32 %v3779_v13, %v3779_v13  ;;  %v939_v19 = vpop.f32.mrb[3].mxu1  ;;  %v3359_v16 = vld [vmem:[%s4240_s8 + $0xb4] ss:$8 sps:$4 sm:$0xff]  }
 0x1e3   : > { %v985_v20 = vmul.f32 %v3781_v15, %v3781_v15  ;;  %v3357_v19 = vld [vmem:[%s4240_s8 + $0xb0] ss:$8 sps:$4 sm:$0xff]  }
 0x1e4   : > { %v987_v24 = vpack.c.bf16 %v984_v18, %v984_v18  ;;  %v3365_v18 = vld [vmem:[%s4241_s9 + $0x60] sm:$0xff]  }
 0x1e5   : > { %v988_v21 = vpack.c.bf16 %v985_v20, %v985_v20  ;;  %v3364_v20 = vld [vmem:[%s4240_s8 + $0xc4] ss:$8 sps:$4 sm:$0xff]  }
 0x1e7   : > { %v975_v25 = vpop.f32.mrb[4].mxu1  ;;  %1214 = vmatprep.mubr.bf16.mxu0 %v988_v21  ;;  %v3366_v21 = vld [vmem:[%s4241_s9 + $0x20] sm:$0xff]  }
 0x1e8   : > { %v3789_v26 = vsub.f32 %v799_v23, %v975_v25  ;;  %v3179_v27 = vpop.f32.mrb[5].mxu1  ;;  %1215 = vmatmul.mubr.bf16.vlgmr.msra.gmra.mrb[12].mxu0 %v987_v24  ;;  %v3370_v23 = vld [vmem:[%s4241_s9 + $0x68] sm:$0xff]   ;;  %v3369_v25 = vld [vmem:[%s4240_s8 + $0xd4] ss:$8 sps:$4 sm:$0xff]  }
 0x1e9   : > { %v978_v28 = vpop.f32.mrb[6].mxu1  ;;  %1268 = vmatpush1.bf16.msra.mxu0 %v3657_v22  ;;  %1299 = vmatprep.mubr.bf16.mxu0 %v3474_v2  ;;  %v3362_v24 = vld [vmem:[%s4240_s8 + $0xc0] ss:$8 sps:$4 sm:$0xff]  }
 0x1ea   : > { %v986_v29 = vmul.f32 %v3789_v26, %v3789_v26  ;;  %v3180_v30 = vpop.f32.mrb[7].mxu1  ;;  %1732 = vmatprep.subr.bf16.mxu0 %v3320_v32  ;;  %v3371_v27 = vld [vmem:[%s4241_s9 + $0x28] sm:$0xff]   ;;  %v3375_v28 = vld [vmem:[%s4241_s9 + $0x70] sm:$0xff]   ;;  %v3380_v32 = vld [vmem:[%s4241_s9 + $0x78] sm:$0xff]  }
 0x1eb   : > { %v3374_v30 = vld [vmem:[%s4240_s8 + $0xe4] ss:$8 sps:$4 sm:$0xff]  }
 0x1ec   : > { %v989_v31 = vpack.c.bf16 %v986_v29, %v986_v29  ;;  %v3367_v29 = vld [vmem:[%s4240_s8 + $0xd0] ss:$8 sps:$4 sm:$0xff]  }
 0x1ee   : > { %3198 = vmatmul.mubr.bf16.vlgmr.msra.gmra.mrb[8].mxu1 %v989_v31  ;;  %v3376_v31 = vld [vmem:[%s4241_s9 + $0x30] sm:$0xff]  }
 0x1ef   : > { %3202 = vmatpush3.bf16.msra.mxu1 %v3710_v51  ;;  %3203 = vmatprep.mubr.msk.bf16.mxu1 %vm3476_vm2, %v3475_v12  ;;  %v3327_v51 = vld [vmem:[%s4240_s8 + $0x30] ss:$8 sps:$4 sm:$0xff]  }
 0x1f0   : > { %3071 = vmatprep.subr.bf16.mxu1 %v3345_v61 }
 0x2bb   : > { %v3054_v33 = vpop.f32.mrb[12].mxu0 }
 0x2bc   : > { %v3055_v22 = vpop.f32.mrb[13].mxu0 }
 0x2bd   : > { %v3056_v34 = vadd.f32 %v3055_v22, %v3054_v33  ;;  %v3057_v35 = vpop.f32.mrb[14].mxu0  ;;  %v3372_v33 = vld [vmem:[%s4240_s8 + $0xe0] ss:$8 sps:$4 sm:$0xff]   ;;  %v3379_v22 = vld [vmem:[%s4240_s8 + $0xf4] ss:$8 sps:$4 sm:$0xff]  }
 0x2be   : > { %v3058_v36 = vpop.f32.mrb[15].mxu0  ;;  %v3377_v35 = vld [vmem:[%s4240_s8 + $0xf0] ss:$8 sps:$4 sm:$0xff]  }
 0x2bf   : > { %v1217_v37 = vadd.f32 1e-05, %v3056_v34  ;;  %v3381_v34 = vld [vmem:[%s4241_s9 + $0x38] sm:$0xff]   ;;  %v3384_v36 = vld [vmem:[%s4240_s8 + $0x104] ss:$8 sps:$4 sm:$0xff]  }
 0x2c1   : > { %v1256_v38 = vpop.f32.mrb[8].mxu1 }
 0x2c2   : > { %v1257_v39 = vadd.f32 %v1256_v38, %v1217_v37  ;;  %v3199_v40 = vpop.f32.mrb[9].mxu1  ;;  %v2905_v37 = vld [vmem:[%s4237_s5 + $0x1] ss:$4 sm:$0x7] }
 0x2c3   : > { %v1259_v41 = vpop.f32.mrb[10].mxu1  ;;  %v2906_v38 = vld [vmem:[%s4237_s5 + $0x2] ss:$4 sm:$0x7] }
 0x2c4   : > { %3448 = vrsqrt.f32 %v1257_v39  ;;  %v3200_v42 = vpop.f32.mrb[11].mxu1  ;;  %v1357_v39 = vrot.slane %v2905_v37, %v3766_v3 }
 0x2c5   : > { %v1361_v42 = vrot.slane %v2905_v37, %v3771_v5 }
 0x2ce   : > { %v3449_v43 = vpop.eup %3448 }
 0x2cf   : > { %v1263_v45 = vpack.c.bf16 %v3449_v43, %v3449_v43 }
 0x2d1   : > { %2903 = vmatmul.mubr.msk.bf16.vlgmr.msra.gmra.mrb[16].mxu0 %vm886_vm4, %v1263_v45  ;;  %3204 = vmatmul.mubr.msk.bf16.vlgmr.msra.gmra.mrb[12].mxu1 %vm886_vm4, %v1263_v45 }
 0x2d2   : > { %1733 = vmatpush1.bf16.msra.mxu0 %v3318_v44  ;;  %3072 = vmatpush3.bf16.msra.mxu1 %v3346_v62  ;;  %v1378_v44 = vrot.slane %v2906_v38, %v3766_v3  ;;  %v1386_v62 = vrot.slane %v2906_v38, %v3776_v9 }
 0x2d3   : > { %1734 = vmatprep.subr.bf16.mxu0 %v3323_v46  ;;  %3073 = vmatprep.subr.bf16.mxu1 %v3350_v0 }
 0x2d6   : > { %1735 = vmatpush1.bf16.msra.mxu0 %v3321_v47  ;;  %3074 = vmatpush3.bf16.msra.mxu1 %v3351_v4 }
 0x2d7   : > { %1736 = vmatprep.subr.bf16.mxu0 %v3326_v48  ;;  %3075 = vmatprep.subr.bf16.mxu1 %v3355_v6  ;;  %v1382_v48 = vrot.slane %v2906_v38, %v3771_v5  ;;  %v3390_v38 = vld [vmem:[%s4240_s8 + $0x120] ss:$8 sps:$4 sm:$0xff]  }
 0x2da   : > { %1737 = vmatpush1.bf16.msra.mxu0 %v3324_v49  ;;  %3076 = vmatpush3.bf16.msra.mxu1 %v3356_v10 }
 0x2db   : > { %1738 = vmatprep.subr.bf16.mxu0 %v3329_v50  ;;  %3077 = vmatprep.subr.bf16.mxu1 %v3360_v11 }
 0x2de   : > { %1739 = vmatpush1.bf16.msra.mxu0 %v3327_v51  ;;  %3078 = vmatpush3.bf16.msra.mxu1 %v3361_v17 }
 0x2df   : > { %1740 = vmatprep.subr.bf16.mxu0 %v3332_v52  ;;  %3079 = vmatprep.subr.bf16.mxu1 %v3365_v18 }
 0x2e2   : > { %1741 = vmatpush1.bf16.msra.mxu0 %v3330_v53  ;;  %3080 = vmatpush3.bf16.msra.mxu1 %v3366_v21 }
 0x2e3   : > { %1742 = vmatprep.subr.bf16.mxu0 %v3335_v54  ;;  %3081 = vmatprep.subr.bf16.mxu1 %v3370_v23 }
 0x2e6   : > { %1743 = vmatpush1.bf16.msra.mxu0 %v3333_v55  ;;  %3082 = vmatpush3.bf16.msra.mxu1 %v3371_v27 }
 0x2e7   : > { %1744 = vmatprep.subr.bf16.mxu0 %v3338_v56  ;;  %3083 = vmatprep.subr.bf16.mxu1 %v3375_v28 }
 0x2ea   : > { %1745 = vmatpush1.bf16.msra.mxu0 %v3336_v57  ;;  %3084 = vmatpush3.bf16.msra.mxu1 %v3376_v31  ;;  %v3382_v31 = vld [vmem:[%s4240_s8 + $0x100] ss:$8 sps:$4 sm:$0xff]  }
 0x2eb   : > { %1746 = vmatprep.subr.bf16.mxu0 %v3341_v58  ;;  %3085 = vmatprep.subr.bf16.mxu1 %v3380_v32  ;;  %v3385_v32 = vld [vmem:[%s4241_s9 + $0x80] sm:$0xff]  }
 0x2ee   : > { %1747 = vmatpush1.bf16.msra.mxu0 %v3339_v59  ;;  %3086 = vmatpush3.bf16.msra.mxu1 %v3381_v34 }
 0x2ef   : > { %1748 = vmatprep.subr.bf16.mxu0 %v3344_v60  ;;  %3207 = vmatprep.subr.bf16.mxu1 %v3475_v12 }
 0x2f2   : > { %1749 = vmatpush1.bf16.msra.mxu0 %v3342_v63 }
 0x2f3   : > { %1750 = vmatprep.subr.bf16.mxu0 %v3349_v1 }
 0x2f6   : > { %1751 = vmatpush1.bf16.msra.mxu0 %v3347_v7 }
 0x2f7   : > { %1752 = vmatprep.subr.bf16.mxu0 %v3354_v8 }
 0x2fa   : > { %1753 = vmatpush1.bf16.msra.mxu0 %v3352_v14 }
 0x2fb   : > { %1754 = vmatprep.subr.bf16.mxu0 %v3359_v16 }
 0x2fe   : > { %1755 = vmatpush1.bf16.msra.mxu0 %v3357_v19 }
 0x2ff   : > { %1756 = vmatprep.subr.bf16.mxu0 %v3364_v20 }
 0x302   : > { %1757 = vmatpush1.bf16.msra.mxu0 %v3362_v24 }
 0x303   : > { %1758 = vmatprep.subr.bf16.mxu0 %v3369_v25 }
 0x306   : > { %1759 = vmatpush1.bf16.msra.mxu0 %v3367_v29 }
 0x307   : > { %1760 = vmatprep.subr.bf16.mxu0 %v3374_v30 }
 0x30a   : > { %1761 = vmatpush1.bf16.msra.mxu0 %v3372_v33 }
 0x30b   : > { %1762 = vmatprep.subr.bf16.mxu0 %v3379_v22  ;;  %v3388_v22 = vld [vmem:[%s4240_s8 + $0x114] ss:$8 sps:$4 sm:$0xff]  }
 0x30e   : > { %1763 = vmatpush1.bf16.msra.mxu0 %v3377_v35  ;;  %v3386_v35 = vld [vmem:[%s4240_s8 + $0x110] ss:$8 sps:$4 sm:$0xff]  }
 0x30f   : > { %1773 = vmatprep.subr.bf16.mxu0 %v3384_v36  ;;  %v3389_v36 = vld [vmem:[%s4241_s9 + $0x88] sm:$0xff]  }
 0x3a4   : > { %v1301_v40 = vpop.f32.mrb[16].mxu0  ;;  %v1342_v41 = vpop.f32.mrb[12].mxu1 }
 0x3a5   : > { %v1348_v43 = vmul.f32 %v1301_v40, %v3779_v13  ;;  %v1303_v45 = vpop.f32.mrb[17].mxu0  ;;  %v3205_v46 = vpop.f32.mrb[13].mxu1  ;;  %v1350_v58 = vmul.f32 %v1342_v41, %v3789_v26  ;;  %v1365_v13 = vrot.slane %v2905_v37, %v3776_v9  ;;  %v3392_v37 = vld [vmem:[%s4240_s8 + $0x124] ss:$8 sps:$4 sm:$0xff]   ;;  %v3396_v40 = vld [vmem:[%s4240_s8 + $0x134] ss:$8 sps:$4 sm:$0xff]  }
 0x3a6   : > { %v1349_v47 = vmul.f32 %v1303_v45, %v3781_v15  ;;  %v1305_v49 = vpop.f32.mrb[18].mxu0  ;;  %v1345_v50 = vpop.f32.mrb[14].mxu1  ;;  %v3394_v41 = vld [vmem:[%s4240_s8 + $0x130] ss:$8 sps:$4 sm:$0xff]   ;;  %v3398_v45 = vld [vmem:[%s4240_s8 + $0x140] ss:$8 sps:$4 sm:$0xff]  }
 0x3a7   : > { %v1369_v51 = vmul.f32 %v1357_v39, %v1348_v43  ;;  %v1306_v52 = vpop.f32.mrb[19].mxu0  ;;  %v3206_v53 = vpop.f32.mrb[15].mxu1  ;;  %v1371_v15 = vmul.f32 %v1365_v13, %v1350_v58  ;;  %v3393_v39 = vld [vmem:[%s4241_s9 + $0x90] sm:$0xff]   ;;  %v3400_v43 = vld [vmem:[%s4240_s8 + $0x144] ss:$8 sps:$4 sm:$0xff]   ;;  %v3413_v58 = vld [vmem:[%s4241_s9 + $0xb8] sm:$0xff]  }
 0x3a8   : > { %v1370_v54 = vmul.f32 %v1361_v42, %v1349_v47  ;;  %v3397_v42 = vld [vmem:[%s4241_s9 + $0x98] sm:$0xff]   ;;  %v3401_v46 = vld [vmem:[%s4241_s9 + $0xa0] sm:$0xff]   ;;  %v3405_v50 = vld [vmem:[%s4241_s9 + $0xa8] sm:$0xff]  }
 0x3a9   : > { %v1390_v55 = vadd.f32 %v1378_v44, %v1369_v51  ;;  %v3963_v63 = vadd.f32 %v1386_v62, %v1371_v15  ;;  %v3404_v47 = vld [vmem:[%s4240_s8 + $0x154] ss:$8 sps:$4 sm:$0xff]   ;;  %v3402_v49 = vld [vmem:[%s4240_s8 + $0x150] ss:$8 sps:$4 sm:$0xff]   ;;  %v3408_v51 = vld [vmem:[%s4240_s8 + $0x164] ss:$8 sps:$4 sm:$0xff]  }
 0x3aa   : > { %v1391_v56 = vadd.f32 %v1382_v48, %v1370_v54  ;;  %v3406_v53 = vld [vmem:[%s4240_s8 + $0x160] ss:$8 sps:$4 sm:$0xff]   ;;  %v3409_v54 = vld [vmem:[%s4241_s9 + $0xb0] sm:$0xff]  }
 0x3ab   : > { %v1393_v57 = vmin.f32 %v1390_v55, 20.0  ;;  %v1395_v0 = vmin.f32 %v3963_v63, 20.0  ;;  %vm1420_vm5 = vcmp.gt.f32.partialorder %v1390_v55, 20.0  ;;  %vm1422_vm7 = vcmp.gt.f32.partialorder %v3963_v63, 20.0 }
 0x3ac   : > { %v1394_v59 = vmin.f32 %v1391_v56, 20.0  ;;  %vm1421_vm6 = vcmp.gt.f32.partialorder %v1391_v56, 20.0 }
 0x3ad   : > { %v1396_v60 = vmul.f32 1.442695, %v1393_v57  ;;  %v1400_v7 = vmul.f32 1.442695, %v1395_v0  ;;  %v3410_v57 = vld [vmem:[%s4240_s8 + $0x170] ss:$8 sps:$4 sm:$0xff]  }
 0x3ae   : > { %v1398_v61 = vmul.f32 1.442695, %v1394_v59 }
 0x3af   : > { %3450 = vpow2.f32 %v1396_v60  ;;  %v2092_v60 = vld [vmem:[%s4244_s12] sm:$0xff] }
 0x3b0   : > { %3452 = vpow2.f32 %v1398_v61  ;;  %v2981_v61 = vcombine.high %v2092_v60, %v2092_v60  ;;  %v2980_v15 = vcombine.low %v2092_v60, %v2092_v60  ;;  %v3441_v60 = vld [vmem:[%s4245_s13 + $0x20] sm:$0xff]  }
 0x3b1   : > { %3454 = vpow2.f32 %v1400_v7  ;;  %v2955_v7 = vld [vmem:[%s4250_s18 + $0x1] ss:$0 sm:$0xff] }
 0x3b2   : > { %v2102_v62 = vsel %vm890_vm3, %v2980_v15, 0 }
 0x3b9   : > { %v3451_v1 = vpop.eup %3450 }
 0x3ba   : > { %v1402_v4 = vadd.f32 2.0, %v3451_v1  ;;  %v3453_v6 = vpop.eup %3452 }
 0x3bb   : > { %v1403_v8 = vadd.f32 2.0, %v3453_v6  ;;  %v3455_v16 = vpop.eup %3454 }
 0x3bc   : > { %v1405_v26 = vmul.f32 %v3451_v1, %v1402_v4  ;;  %v1404_v21 = vadd.f32 2.0, %v3455_v16 }
 0x3bd   : > { %v1406_v10 = vmul.f32 %v3453_v6, %v1403_v8 }
 0x3be   : > { %v1408_v11 = vadd.f32 2.0, %v1405_v26  ;;  %v1407_v27 = vmul.f32 %v3455_v16, %v1404_v21 }
 0x3bf   : > { %v1409_v14 = vadd.f32 2.0, %v1406_v10 }
 0x3c0   : > { %3456 = vrcp.f32 %v1408_v11  ;;  %v1410_v34 = vadd.f32 2.0, %v1407_v27  ;;  %v3421_v27 = vld [vmem:[%s4243_s11 + $0x10] sm:$0xff]  }
 0x3c1   : > { %3458 = vrcp.f32 %v1409_v14 }
 0x3c2   : > { %3460 = vrcp.f32 %v1410_v34  ;;  %v3429_v34 = vld [vmem:[%s4243_s11 + $0x30] sm:$0xff]  }
 0x3ca   : > { %v3457_v17 = vpop.eup %3456 }
 0x3cb   : > { %v1414_v9 = vmul.f32 2.0, %v3457_v17  ;;  %v3459_v18 = vpop.eup %3458 }
 0x3cc   : > { %v1415_v19 = vmul.f32 2.0, %v3459_v18  ;;  %v3461_v44 = vpop.eup %3460  ;;  %v3417_v18 = vld [vmem:[%s4243_s11] sm:$0xff]  }
 0x3cd   : > { %v1417_v20 = vsub.f32 1.0, %v1414_v9  ;;  %v1416_v48 = vmul.f32 2.0, %v3461_v44 }
 0x3ce   : > { %v1418_v23 = vsub.f32 1.0, %v1415_v19 }
 0x3cf   : > { %v1423_v24 = vmul.f32 %v1417_v20, %v1390_v55  ;;  %v1419_v52 = vsub.f32 1.0, %v1416_v48 }
 0x3d0   : > { %v1424_v25 = vmul.f32 %v1418_v23, %v1391_v56  ;;  %v3418_v23 = vld [vmem:[%s4243_s11 + $0x48] sm:$0xff]  }
 0x3d1   : > { %v1426_v28 = vsel %vm1420_vm5, %v1390_v55, %v1423_v24  ;;  %v3412_v55 = vld [vmem:[%s4240_s8 + $0x174] ss:$8 sps:$4 sm:$0xff]   ;;  %v3419_v24 = vld [vmem:[%s4243_s11 + $0x8] sm:$0xff]  }
 0x3d2   : > { %v1427_v29 = vsel %vm1421_vm6, %v1391_v56, %v1424_v25  ;;  %v1429_v33 = vpack.c.bf16 %v1426_v28, %v1426_v28  ;;  %v1425_v56 = vmul.f32 %v1419_v52, %v3963_v63  ;;  %v3420_v25 = vld [vmem:[%s4243_s11 + $0x50] sm:$0xff]   ;;  %v3422_v28 = vld [vmem:[%s4243_s11 + $0x58] sm:$0xff]   ;;  %v3432_v52 = vld [vmem:[%s4245_s13 + $0x40] sm:$0xff]  }
 0x3d3   : > { %v1430_v30 = vpack.c.bf16 %v1427_v29, %v1427_v29  ;;  %v3423_v29 = vld [vmem:[%s4243_s11 + $0x18] sm:$0xff]  }
 0x3d4   : > { %v1428_v13 = vsel %vm1422_vm7, %v3963_v63, %v1425_v56  ;;  %v3416_v63 = vld [vmem:[%s4243_s11 + $0x40] sm:$0xff]   ;;  %v3436_v56 = vld [vmem:[%s4245_s13 + $0x50] sm:$0xff]  }
 0x3d5   : > { %1764 = vmatprep.mubr.bf16.mxu0 %v1430_v30  ;;  %2043 = vmatprep.mubr.bf16.mxu1 %v1430_v30  ;;  %v1431_v59 = vpack.c.bf16 %v1428_v13, %v1428_v13  ;;  %v3424_v30 = vld [vmem:[%s4243_s11 + $0x60] sm:$0xff]   ;;  %v3439_v13 = vld [vmem:[%s4245_s13 + $0x18] sm:$0xff]  }
 0x3d6   : > { %1765 = vmatmul.mubr.bf16.vlgmr.msra.gmra.mrb[20].mxu0 %v1429_v33  ;;  %2044 = vmatmul.mubr.bf16.vlgmr.msra.gmra.mrb[16].mxu1 %v1429_v33  ;;  %v3427_v33 = vld [vmem:[%s4243_s11 + $0x28] sm:$0xff]  }
 0x3d7   : > { %1774 = vmatpush1.bf16.msra.mxu0 %v3382_v31  ;;  %3208 = vmatpush3.bf16.msra.mxu1 %v3385_v32  ;;  %v3425_v31 = vld [vmem:[%s4243_s11 + $0x20] sm:$0xff]   ;;  %v3426_v32 = vld [vmem:[%s4243_s11 + $0x68] sm:$0xff]  }
 0x3d8   : > { %1775 = vmatprep.subr.bf16.mxu0 %v3388_v22  ;;  %3209 = vmatprep.subr.bf16.mxu1 %v3475_v12  ;;  %v3428_v22 = vld [vmem:[%s4243_s11 + $0x70] sm:$0xff]  }
 0x3d9   : > { %1805 = vmatprep.mubr.bf16.mxu0 %v3474_v2  ;;  %3223 = vmatprep.mubr.msk.bf16.mxu1 %vm3476_vm2, %v3475_v12 }
 0x3db   : > { %1776 = vmatpush1.bf16.msra.mxu0 %v3386_v35  ;;  %3210 = vmatpush3.bf16.msra.mxu1 %v3389_v36  ;;  %v3430_v35 = vld [vmem:[%s4243_s11 + $0x78] sm:$0xff]  }
 0x3dc   : > { %1777 = vmatprep.subr.bf16.mxu0 %v3392_v37  ;;  %3211 = vmatprep.subr.bf16.mxu1 %v3475_v12  ;;  %v3431_v36 = vld [vmem:[%s4243_s11 + $0x38] sm:$0xff]   ;;  %v1480_v37 = vld [vmem:[%s4242_s10] ss:$4 sm:$0x3] }
 0x3df   : > { %1778 = vmatpush1.bf16.msra.mxu0 %v3390_v38  ;;  %3212 = vmatpush3.bf16.msra.mxu1 %v3393_v39  ;;  %v1485_v38 = vrot.slane %v1480_v37, %v3766_v3  ;;  %v1489_v39 = vrot.slane %v1480_v37, %v3771_v5 }
 0x3e0   : > { %1779 = vmatprep.subr.bf16.mxu0 %v3396_v40  ;;  %3213 = vmatprep.subr.bf16.mxu1 %v3475_v12 }
 0x3e3   : > { %1780 = vmatpush1.bf16.msra.mxu0 %v3394_v41  ;;  %3214 = vmatpush3.bf16.msra.mxu1 %v3397_v42 }
 0x3e4   : > { %1781 = vmatprep.subr.bf16.mxu0 %v3400_v43  ;;  %3215 = vmatprep.subr.bf16.mxu1 %v3475_v12 }
 0x3e7   : > { %1782 = vmatpush1.bf16.msra.mxu0 %v3398_v45  ;;  %3216 = vmatpush3.bf16.msra.mxu1 %v3401_v46 }
 0x3e8   : > { %1783 = vmatprep.subr.bf16.mxu0 %v3404_v47  ;;  %3217 = vmatprep.subr.bf16.mxu1 %v3475_v12 }
 0x3eb   : > { %1784 = vmatpush1.bf16.msra.mxu0 %v3402_v49  ;;  %3218 = vmatpush3.bf16.msra.mxu1 %v3405_v50 }
 0x3ec   : > { %1785 = vmatprep.subr.bf16.mxu0 %v3408_v51  ;;  %3219 = vmatprep.subr.bf16.mxu1 %v3475_v12 }
 0x3ef   : > { %1786 = vmatpush1.bf16.msra.mxu0 %v3406_v53  ;;  %3220 = vmatpush3.bf16.msra.mxu1 %v3409_v54  ;;  %v3433_v53 = vld [vmem:[%s4245_s13] sm:$0xff]   ;;  %v3434_v54 = vld [vmem:[%s4245_s13 + $0x48] sm:$0xff]  }
 0x3f0   : > { %1787 = vmatprep.subr.bf16.mxu0 %v3412_v55  ;;  %3221 = vmatprep.subr.bf16.mxu1 %v3475_v12  ;;  %v3435_v55 = vld [vmem:[%s4245_s13 + $0x8] sm:$0xff]  }
 0x3f3   : > { %1788 = vmatpush1.bf16.msra.mxu0 %v3410_v57  ;;  %3222 = vmatpush3.bf16.msra.mxu1 %v3413_v58  ;;  %v3437_v57 = vld [vmem:[%s4245_s13 + $0x10] sm:$0xff]   ;;  %v3438_v58 = vld [vmem:[%s4245_s13 + $0x58] sm:$0xff]  }
 0x3f4   : > { %2982 = vmatprep.subr.msk.bf16.mxu1 %vm890_vm3, %v2981_v61  ;;  %3000 = vmatprep.subr.msk.bf16.mxu0 %vm890_vm3, %v2981_v61  ;;  %v3442_v61 = vld [vmem:[%s4245_s13 + $0x68] sm:$0xff]  }
 0x3f6   : > { %1806 = vmatmul.mubr.bf16.vlgmr.msra.gmra.mrb[20].mxu0 %v1431_v59  ;;  %3224 = vmatmul.mubr.bf16.vlgmr.msra.gmra.mrb[20].mxu1 %v1431_v59  ;;  %v3440_v59 = vld [vmem:[%s4245_s13 + $0x60] sm:$0xff]  }
 0x3f7   : > { %2139 = vmatprep.mubr.bf16.mxu1 %v3474_v2  ;;  %2359 = vmatprep.mubr.bf16.mxu0 %v3474_v2 }
 0x3f8   : > { %2108 = vmatpush1.bf16.msra.mxu1 %v2102_v62  ;;  %2328 = vmatpush1.bf16.msra.mxu0 %v2102_v62 }
 0x3f9   : > { %3102 = vmatprep.subr.bf16.mxu1 %v3416_v63 }
 0x4a9   : > { %v3087_v2 = vpop.f32.mrb[16].mxu1 }
 0x4aa   : > { %v3088_v0 = vpop.f32.mrb[17].mxu1 }
 0x4ab   : > { %v3089_v1 = vadd.f32 %v3088_v0, %v3087_v2  ;;  %v3090_v4 = vpop.f32.mrb[18].mxu1 }
 0x4ac   : > { %v3091_v6 = vpop.f32.mrb[19].mxu1 }
 0x4ad   : > { %v2046_v8 = vadd.f32 %v3089_v1, %v2955_v7  ;;  %v3443_v7 = vld [vmem:[%s4245_s13 + $0x28] sm:$0xff]  }
 0x4c9   : > { %v1807_v26 = vpop.f32.mrb[20].mxu0  ;;  %v2085_v10 = vpop.f32.mrb[20].mxu1 }
 0x4ca   : > { %v2086_v11 = vadd.f32 %v2085_v10, %v2046_v8  ;;  %v1809_v14 = vpop.f32.mrb[21].mxu0  ;;  %v3225_v16 = vpop.f32.mrb[21].mxu1  ;;  %v3256_v40 = vadd.f32 %v1807_v26, %v1485_v38  ;;  %v3444_v8 = vld [vmem:[%s4245_s13 + $0x70] sm:$0xff]   ;;  %v2435_v26 = vld [vmem:[%s4246_s14] sm:$0xff]  ;;  %v2436_v10 = vld [vmem:[%s4246_s14 + $0x8] sm:$0xff] }
 0x4cb   : > { %v1811_v17 = vpop.f32.mrb[22].mxu0  ;;  %v2088_v9 = vpop.f32.mrb[22].mxu1  ;;  %v3257_v41 = vadd.f32 %v1809_v14, %v1489_v39  ;;  %v3445_v14 = vld [vmem:[%s4245_s13 + $0x30] sm:$0xff]   ;;  %v3477_v16 = vmov 0.0|0.0  }
 0x4cc   : > { %v2091_v19 = vpack.c.bf16 %v2086_v11, %v2086_v11  ;;  %v1812_v20 = vpop.f32.mrb[23].mxu0  ;;  %v3226_v21 = vpop.f32.mrb[23].mxu1  ;;  %v3248_v11 = vpack.c.bf16 %v2436_v10, %v2435_v26  ;;  %3247 = vmatprep.subr.bf16.mxu0 %v3477_v16  ;;  %v3446_v17 = vld [vmem:[%s4245_s13 + $0x78] sm:$0xff]   ;;  %v2437_v9 = vld [vmem:[%s4246_s14 + $0x10] sm:$0xff] }
 0x4cd   : > { %v3447_v20 = vld [vmem:[%s4245_s13 + $0x38] sm:$0xff]   ;;  %v2439_v21 = vld [vmem:[%s4246_s14 + $0x20] sm:$0xf] }
 0x4ce   : > { %2983 = vmatmul.mubr.msk.bf16.vlgmr.msra.gmra.mrb[24].mxu1 %vm886_vm4, %v2091_v19 }
 0x4cf   : > { %3103 = vmatpush3.bf16.msra.mxu1 %v3417_v18  ;;  %v2438_v18 = vld [vmem:[%s4246_s14 + $0x18] sm:$0xff] }
 0x4d0   : > { %3104 = vmatprep.subr.bf16.mxu1 %v3418_v23  ;;  %v3251_v19 = vpack.c.bf16 %v2438_v18, %v2437_v9  ;;  %v2434_v23 = vld [vmem:[%s623_s23] sm:$0xff]  ;;  %s627_s23 = scalar_lea.vmem %s4260_s2, %s3608_s20 }
 0x4d3   : > { %3105 = vmatpush3.bf16.msra.mxu1 %v3419_v24  ;;  %v3002_v24 = vld [vmem:[%s4242_s10 + $0x1] ss:$4 sm:$0x3] }
 0x4d4   : > { %3106 = vmatprep.subr.bf16.mxu1 %v3420_v25  ;;  %v3003_v25 = vld [vmem:[%s4242_s10 + $0x2] ss:$4 sm:$0x3] }
 0x4d7   : > { %3107 = vmatpush3.bf16.msra.mxu1 %v3421_v27  ;;  %v2376_v27 = vrot.slane %v3002_v24, %v3766_v3 }
 0x4d8   : > { %3108 = vmatprep.subr.bf16.mxu1 %v3422_v28 }
 0x4db   : > { %3109 = vmatpush3.bf16.msra.mxu1 %v3423_v29  ;;  %v2380_v29 = vrot.slane %v3002_v24, %v3771_v5 }
 0x4dc   : > { %3110 = vmatprep.subr.bf16.mxu1 %v3424_v30 }
 0x4df   : > { %3111 = vmatpush3.bf16.msra.mxu1 %v3425_v31  ;;  %v2391_v31 = vrot.slane %v3003_v25, %v3766_v3  ;;  %v2661_v3 = vld [vmem:[%s4248_s16] sm:$0xff] }
 0x4e0   : > { %3112 = vmatprep.subr.bf16.mxu1 %v3426_v32 }
 0x4e3   : > { %3113 = vmatpush3.bf16.msra.mxu1 %v3427_v33 }
 0x4e4   : > { %3114 = vmatprep.subr.bf16.mxu1 %v3428_v22  ;;  %v2395_v22 = vrot.slane %v3003_v25, %v3771_v5 }
 0x4e7   : > { %3115 = vmatpush3.bf16.msra.mxu1 %v3429_v34 }
 0x4e8   : > { %3116 = vmatprep.subr.bf16.mxu1 %v3430_v35 }
 0x4eb   : > { %3117 = vmatpush3.bf16.msra.mxu1 %v3431_v36 }
 0x4ec   : > { %3130 = vmatprep.subr.bf16.mxu1 %v3432_v52 }
 0x5a1   : > { %v2141_v42 = vpop.f32.mrb[24].mxu1 }
 0x5a2   : > { %v4113_v43 = vsub.f32 %v3256_v40, %v2141_v42  ;;  %v2143_v44 = vpop.f32.mrb[25].mxu1  ;;  %v2662_v42 = vld [vmem:[%s4248_s16 + $0x8] sm:$0xff] }
 0x5a3   : > { %v4115_v45 = vsub.f32 %v3257_v41, %v2143_v44  ;;  %v2145_v46 = vpop.f32.mrb[26].mxu1  ;;  %v2746_v44 = vld [vmem:[%s627_s23] sm:$0xff] }
 0x5a4   : > { %v2150_v47 = vmul.f32 %v4113_v43, %v4113_v43  ;;  %v2146_v48 = vpop.f32.mrb[27].mxu1  ;;  %2748 = vrot.lane.b32.xlu0 %v2746_v44, %s3478_s24 }
 0x5a5   : > { %v2151_v49 = vmul.f32 %v4115_v45, %v4115_v45 }
 0x5a6   : > { %v2152_v51 = vpack.c.bf16 %v2150_v47, %v2150_v47 }
 0x5a7   : > { %v2153_v50 = vpack.c.bf16 %v2151_v49, %v2151_v49  ;;  %v3022_v49 = vld [vmem:[%s4247_s15] ss:$0 sm:$0xff] }
 0x5a9   : > { %2314 = vmatprep.mubr.bf16.mxu1 %v2153_v50 }
 0x5aa   : > { %2315 = vmatmul.mubr.bf16.vlgmr.msra.gmra.mrb[28].mxu1 %v2152_v51 }
 0x5ab   : > { %3131 = vmatpush3.bf16.msra.mxu1 %v3433_v53  ;;  %v3023_v53 = vld [vmem:[%s4249_s17] ss:$0 sm:$0xff] }
 0x5ac   : > { %3132 = vmatprep.subr.bf16.mxu1 %v3434_v54 }
 0x5af   : > { %3133 = vmatpush3.bf16.msra.mxu1 %v3435_v55 }
 0x5b0   : > { %3134 = vmatprep.subr.bf16.mxu1 %v3436_v56 }
 0x5b3   : > { %3135 = vmatpush3.bf16.msra.mxu1 %v3437_v57 }
 0x5b4   : > { %3136 = vmatprep.subr.bf16.mxu1 %v3438_v58 }
 0x5b7   : > { %3137 = vmatpush3.bf16.msra.mxu1 %v3439_v13 }
 0x5b8   : > { %3138 = vmatprep.subr.bf16.mxu1 %v3440_v59 }
 0x5bb   : > { %3139 = vmatpush3.bf16.msra.mxu1 %v3441_v60 }
 0x5bc   : > { %3140 = vmatprep.subr.bf16.mxu1 %v3442_v61 }
 0x5bf   : > { %3141 = vmatpush3.bf16.msra.mxu1 %v3443_v7 }
 0x5c0   : > { %3142 = vmatprep.subr.bf16.mxu1 %v3444_v8 }
 0x5c3   : > { %3143 = vmatpush3.bf16.msra.mxu1 %v3445_v14 }
 0x5c4   : > { %3144 = vmatprep.subr.bf16.mxu1 %v3446_v17 }
 0x5c7   : > { %3145 = vmatpush3.bf16.msra.mxu1 %v3447_v20 }
 0x616   : > { %v2749_v13 = vpop.permute.xlu0 %2748 }
 0x67d   : > { %v3118_v15 = vpop.f32.mrb[28].mxu1 }
 0x67e   : > { %v3119_v62 = vpop.f32.mrb[29].mxu1 }
 0x67f   : > { %v3120_v63 = vadd.f32 %v3119_v62, %v3118_v15  ;;  %v3121_v2 = vpop.f32.mrb[30].mxu1 }
 0x680   : > { %v3122_v0 = vpop.f32.mrb[31].mxu1 }
 0x681   : > { %v2317_v1 = vadd.f32 1e-05, %v3120_v63 }
 0x683   : > { %3462 = vrsqrt.f32 %v2317_v1 }
 0x68d   : > { %v3463_v4 = vpop.eup %3462 }
 0x68e   : > { %v2323_v6 = vpack.c.bf16 %v3463_v4, %v3463_v4 }
 0x690   : > { %3001 = vmatmul.mubr.msk.bf16.vlgmr.msra.gmra.mrb[24].mxu0 %vm886_vm4, %v2323_v6 }
 0x691   : > { %3237 = vmatprep.mubr.msk.f32.mxu0 %vm3476_vm2, %v3475_v12  ;;  %3249 = vmatpush3.bf16.msra.mxu0 %v3248_v11 }
 0x692   : > { %3250 = vmatprep.subr.bf16.mxu0 %v3477_v16 }
 0x695   : > { %3252 = vmatpush3.bf16.msra.mxu0 %v3251_v19 }
 0x696   : > { %3235 = vmatprep.subr.mxu0 %v3475_v12 }
 0x699   : > { %3236 = vmatpush3.msk.msra.mxu0 %vm890_vm3, %v2439_v21 }
 0x69a   : > { %3238 = vmatmul.mubr.msk.f32.vlgmr.msra.gmra.mrb[28].mxu0 %vm2440_vm8, %v2434_v23  ;;  %3253 = vmatprep.subr.bf16.mxu0 %v3477_v16 }
 0x69b   : > { %3244 = vmatprep.mubr.msk.f32.mxu0 %vm3476_vm2, %v3475_v12 }
 0x763   : > { %v2361_v28 = vpop.f32.mrb[24].mxu0 }
 0x764   : > { %v2368_v30 = vmul.f32 %v2361_v28, %v4113_v43  ;;  %v2363_v32 = vpop.f32.mrb[25].mxu0  ;;  %v3254_v43 = vpack.c.bf16 %v2662_v42, %v2661_v3 }
 0x765   : > { %v2369_v12 = vmul.f32 %v2363_v32, %v4115_v45  ;;  %v2365_v33 = vpop.f32.mrb[26].mxu0 }
 0x766   : > { %v2383_v34 = vmul.f32 %v2376_v27, %v2368_v30  ;;  %v2366_v35 = vpop.f32.mrb[27].mxu0  ;;  %3255 = vmatpush3.bf16.msra.mxu0 %v3254_v43 }
 0x767   : > { %v2384_v36 = vmul.f32 %v2380_v29, %v2369_v12 }
 0x768   : > { %v2398_v37 = vadd.f32 %v2391_v31, %v2383_v34 }
 0x769   : > { %v2399_v38 = vadd.f32 %v2395_v22, %v2384_v36 }
 0x76a   : > { %v2400_v40 = vpack.c.bf16 %v2398_v37, %v2398_v37 }
 0x76b   : > { %v2401_v39 = vpack.c.bf16 %v2399_v38, %v2399_v38 }
 0x76d   : > { %2645 = vmatprep.mubr.bf16.mxu1 %v2401_v39  ;;  %v2513_v41 = vpop.f32.mrb[28].mxu0 }
 0x76e   : > { %2646 = vmatmul.mubr.bf16.vlgmr.msra.gmra.mrb[32].mxu1 %v2400_v40  ;;  %v3239_v5 = vpop.f32.mrb[29].mxu0 }
 0x841   : > { %v3146_v45 = vpop.f32.mrb[32].mxu1 }
 0x842   : > { %v3147_v46 = vpop.f32.mrb[33].mxu1 }
 0x843   : > { %v3148_v47 = vadd.f32 %v3147_v46, %v3146_v45  ;;  %v3149_v48 = vpop.f32.mrb[34].mxu1 }
 0x844   : > { %v3150_v50 = vpop.f32.mrb[35].mxu1 }
 0x845   : > { %v2648_v51 = vadd.f32 %v3148_v47, %v2513_v41 }
 0x847   : > { %v2660_v52 = vadd.f32 %v3022_v49, %v2648_v51 }
 0x849   : > { %3245 = vmatmul.mubr.msk.f32.vlgmr.msra.gmra.mrb[30].mxu0 %vm2670_vm9, %v2660_v52 }
 0x91c   : > { %v2740_v54 = vpop.f32.mrb[30].mxu0 }
 0x91d   : > { %v2741_v55 = vadd.f32 %v3023_v53, %v2740_v54  ;;  %v3246_v56 = vpop.f32.mrb[31].mxu0 }
 0x91f   : > { %v2744_v57 = vmul.f32 1.442695, %v2741_v55  ;;  %v2759_v58 = vmul.f32 %v2741_v55, %v2741_v55 }
 0x921   : > { %3464 = vpow2.f32 %v2744_v57  ;;  %2761 = vrot.lane.b32.xlu0 %v2759_v58, %s3478_s24 }
 0x92b   : > { %v3465_v59 = vpop.eup %3464 }
 0x92c   : > { %v2751_v60 = vmul.f32 %v3465_v59, %v2749_v13  ;;  %v2758_v15 = vmul.f32 %v3465_v59, %v3465_v59 }
 0x92e   : > { %2753 = vrot.lane.b32.xlu1 %v2751_v60, %s3479_s27 }
 0x993   : > { %v2762_v61 = vpop.permute.xlu0 %2761 }
 0x994   : > { %v2764_v62 = vadd.f32 %v2762_v61, %v2758_v15 }
 0x996   : > { %v2765_v63 = vsub.f32 %v2764_v62, %v2741_v55 }
 0x998   : > { %v3025_v1 = vadd.f32 -0.5, %v2765_v63 }
 0x9a0   : > { %v2754_v2 = vpop.permute.xlu1 %2753 }
 0x9a1   : > { %v2756_v0 = vadd.f32 %v2754_v2, %v2741_v55 }
 0x9a3   : > { %2757 = vst.msk [vmem:[%s631_s21] sm:$0xff] %vm2670_vm9, %v2756_v0 }
 0x9a4   : > { %2768 = vst.msk [vmem:[%s631_s21] sm:$0xff] %vm2767_vm10, %v3025_v1 }
 0x9a5 PF: > { %s29_s0 = sadd.s32 1, %s3472_s0  }
 0x9a6   : > { %p26_p4 = scmp.ge.s32.totalorder %s29_s0, 4  }
 0x9a8   :  { %28 = sbr.rel (!%p26_p4) target bundleno = 5 (0x5), region = 136 }

</bundles_post_ra>
